<compile_context>
chip_gen: v7x
topology: tpu7x:2x2x1
jax: 0.10.0
libtpu: 0.0.40
codegen_flags: <defaults>
</compile_context>

<pallas_src>
import jax
import jax.numpy as jnp
from jax.experimental import pallas as pl
from jax.experimental.pallas import tpu as pltpu

LANES = 128              # lane-dense output width
CDTYPE = jnp.bfloat16    # MXU input dtype (f32 accumulation)


def _round_up(x, m):
    return (x + m - 1) // m * m


def _pad_to(x, shape):
    return jnp.pad(x, [(0, t - s) for s, t in zip(x.shape, shape)])


def _pick_default_tile_m():
    # Generation-aware tile: v5e/v6e have 128 MiB VMEM, v7x only 64 MiB.
    try:
        vmem = pltpu.get_tpu_info().vmem_capacity_bytes
        return 8192 if vmem > 96 * 1024 * 1024 else 4096
    except Exception:
        return 4096   # safe on every generation (v7x has the least VMEM)


CONV_TILE_M = _pick_default_tile_m()


def _pick_tile(M, tile_m, min_blocks=2):
    """Tile size TM (multiple of 8) and padded extent Mp = k*TM.

    Guarantees >= min_blocks grid steps on the 'parallel' axis when M is large
    enough, so both v7x TensorCores get work under megacore sharding."""
    TM = min(tile_m, _round_up(M, 8))
    if M > 8 and pl.cdiv(M, TM) < min_blocks:
        TM = _round_up(pl.cdiv(M, min_blocks), 8)
    Mp = _round_up(M, TM)
    return TM, Mp


# ----------------------------------------------------------------------------
# Kernel 1: fused im2col-matmul + 2x2 max-pool + bias + ReLU
#   grid = (M tiles [parallel],)
#   The input block carries all 4 pool-window positions; the pool is a max tree
#   over four MXU matmuls, so there is no scratch accumulator and no revisit.
# ----------------------------------------------------------------------------
def _conv_relu_pool_kernel(x_ref, w_ref, b_ref, o_ref):
    # x_ref: (4, TM, Kp) bf16   w_ref: (Kp, 128) bf16 (resident)
    # b_ref: (1, 128) f32 (resident)   o_ref: (TM, 128) bf16
    w = w_ref[...]
    y0 = jnp.dot(x_ref[0], w, preferred_element_type=jnp.float32)
    y1 = jnp.dot(x_ref[1], w, preferred_element_type=jnp.float32)
    y2 = jnp.dot(x_ref[2], w, preferred_element_type=jnp.float32)
    y3 = jnp.dot(x_ref[3], w, preferred_element_type=jnp.float32)
    y = jnp.maximum(jnp.maximum(y0, y1), jnp.maximum(y2, y3))
    # Per-channel bias commutes with max and ReLU is monotone, so bias+ReLU
    # once after the pool is exact and saves 3 bias-adds / 3 relus per tile.
    o_ref[...] = jnp.maximum(y + b_ref[...], 0.0).astype(o_ref.dtype)


def conv_relu_pool(x_nhwc, w_mat, b_row, cout, *, tile_m=None):
    """5x5 VALID conv + bias + ReLU + MaxPool(2,2). NHWC in, NHWC (pooled) out."""
    if tile_m is None:
        tile_m = CONV_TILE_M
    B, H, W, Cin = x_nhwc.shape
    k = 5
    Ho, Wo = H - k + 1, W - k + 1
    Hp, Wp = Ho // 2, Wo // 2
    K = k * k * Cin
    Kp = w_mat.shape[0]     # K padded to a multiple of 128 at param-prep time

    # Wrapper glue (XLA), done entirely in bf16: im2col with rows grouped by the
    # 2x2 pool-window position so the kernel folds the pool into an in-register max.
    # TODO(synk): build the patches inside the kernel from a resident NHWC image
    # tile (removes the k*k-fold activation expansion of the XLA im2col entirely).
    x_nhwc = x_nhwc.astype(CDTYPE)
    pats = jnp.stack(
        [x_nhwc[:, ki:ki + Ho, kj:kj + Wo, :] for ki in range(k) for kj in range(k)],
        axis=3,
    )                                                    # (B, Ho, Wo, k*k, Cin)
    pats = pats.reshape(B, Hp, 2, Wp, 2, K)              # split (Ho,Wo) -> (Hp,2,Wp,2)
    pats = jnp.transpose(pats, (2, 4, 0, 1, 3, 5))        # (di, dj, B, Hp, Wp, K)
    pats = pats.reshape(4, B * Hp * Wp, K)

    M = B * Hp * Wp
    TM, Mp = _pick_tile(M, tile_m)
    # Single pad pass: M padding (rows) + K padding to 128 lanes (zeros match
    # the zero-padded weight rows, so results are unaffected).
    pats = jnp.pad(pats, ((0, 0), (0, Mp - M), (0, Kp - K)))

    # Explicit VMEM budget (input double-buffer dominates) so large tiles on
    # v5e/v6e don't trip the 32 MiB default scoped limit; capped for v7x.
    vmem_bytes = (2 * (4 * TM * Kp * 2)       # pats block, double-buffered, bf16
                  + 2 * (TM * LANES * 2)      # output block, double-buffered, bf16
                  + Kp * LANES * 2            # resident weights
                  + LANES * 4)                # resident bias
    vmem_limit = int(min(max(vmem_bytes * 5 // 4, 32 * 1024 * 1024), 64 * 1024 * 1024))

    out = pl.pallas_call(
        _conv_relu_pool_kernel,
        out_shape=jax.ShapeDtypeStruct((Mp, LANES), CDTYPE),
        grid_spec=pltpu.PrefetchScalarGridSpec(
            num_scalar_prefetch=0,
            grid=(Mp // TM,),
            in_specs=[
                pl.BlockSpec((4, TM, Kp), lambda i: (0, i, 0)),
                pl.BlockSpec((Kp, LANES), lambda i: (0, 0)),   # resident weights
                pl.BlockSpec((1, LANES), lambda i: (0, 0)),    # resident bias
            ],
            out_specs=pl.BlockSpec((TM, LANES), lambda i: (i, 0)),
        ),
        compiler_params=pltpu.CompilerParams(
            dimension_semantics=("parallel",),
            vmem_limit_bytes=vmem_limit),
    )(pats, w_mat, b_row)

    # Padded lanes/rows are exactly zero (zero-padded weight cols + bias lanes);
    # this slice fuses into the next stage's gather under XLA.
    return out[:M, :cout].reshape(B, Hp, Wp, cout)        # NHWC pooled activation


# ----------------------------------------------------------------------------
# Kernel 2: fused 3-layer MLP (fc1+ReLU, fc2+ReLU, fc3), weights resident,
#           grid over batch tiles, 128-padded lane-dense intermediates.
# TODO(synk): fuse conv2+pool+flatten with this MLP into one pallas_call to
#             remove the conv2 activation HBM round-trip at large batch.
# ----------------------------------------------------------------------------
def _mlp3_kernel(x_ref, w1_ref, b1_ref, w2_ref, b2_ref, w3_ref, b3_ref, o_ref):
    h = jnp.dot(x_ref[...], w1_ref[...], preferred_element_type=jnp.float32)
    h = jnp.maximum(h + b1_ref[...], 0.0).astype(w2_ref.dtype)
    h = jnp.dot(h, w2_ref[...], preferred_element_type=jnp.float32)
    h = jnp.maximum(h + b2_ref[...], 0.0).astype(w3_ref.dtype)
    y = jnp.dot(h, w3_ref[...], preferred_element_type=jnp.float32)
    o_ref[...] = y + b3_ref[...]


def mlp3(x, w1, b1, w2, b2, w3, b3, *, tile_m=512):
    M, K = x.shape
    TM, Mp = _pick_tile(M, tile_m)
    if Mp != M:
        x = jnp.pad(x, ((0, Mp - M), (0, 0)))
    x = x.astype(CDTYPE)

    out = pl.pallas_call(
        _mlp3_kernel,
        out_shape=jax.ShapeDtypeStruct((Mp, LANES), jnp.float32),
        grid_spec=pltpu.PrefetchScalarGridSpec(
            num_scalar_prefetch=0,
            grid=(Mp // TM,),
            in_specs=[
                pl.BlockSpec((TM, K), lambda i: (i, 0)),
                pl.BlockSpec(w1.shape, lambda i: (0, 0)),
                pl.BlockSpec(b1.shape, lambda i: (0, 0)),
                pl.BlockSpec(w2.shape, lambda i: (0, 0)),
                pl.BlockSpec(b2.shape, lambda i: (0, 0)),
                pl.BlockSpec(w3.shape, lambda i: (0, 0)),
                pl.BlockSpec(b3.shape, lambda i: (0, 0)),
            ],
            out_specs=pl.BlockSpec((TM, LANES), lambda i: (i, 0)),
        ),
        compiler_params=pltpu.CompilerParams(dimension_semantics=("parallel",)),
    )(x, w1, b1, w2, b2, w3, b3)
    return out[:M]


# ----------------------------------------------------------------------------
# Parameters: PyTorch layout + default init, then one-time prep into the
# padded / permuted / bf16 layout the kernels expect.
# ----------------------------------------------------------------------------
def init_params(key):
    def u(k, shape, fan_in):
        b = 1.0 / jnp.sqrt(jnp.float32(fan_in))
        return jax.random.uniform(k, shape, jnp.float32, -b, b)

    ks = jax.random.split(key, 10)
    return {
        "conv1_w": u(ks[0], (6, 3, 5, 5), 75),     # (O, I, kH, kW)
        "conv1_b": u(ks[1], (6,), 75),
        "conv2_w": u(ks[2], (16, 6, 5, 5), 150),
        "conv2_b": u(ks[3], (16,), 150),
        "fc1_w": u(ks[4], (120, 400), 400),        # (out, in) as in PyTorch
        "fc1_b": u(ks[5], (120,), 400),
        "fc2_w": u(ks[6], (84, 120), 120),
        "fc2_b": u(ks[7], (84,), 120),
        "fc3_w": u(ks[8], (10, 84), 84),
        "fc3_b": u(ks[9], (10,), 84),
    }


def _conv_wmat(w_oihw):
    cout, cin, k, _ = w_oihw.shape
    K = k * k * cin
    wm = jnp.transpose(w_oihw, (2, 3, 1, 0)).reshape(K, cout)   # rows ordered (ki, kj, ci)
    Kp = _round_up(K, LANES)                                    # 75->128, 150->256
    return _pad_to(wm, (Kp, LANES)).astype(CDTYPE)


def prepare_params(p):
    kp = {
        "c1_w": _conv_wmat(p["conv1_w"]),
        "c1_b": _pad_to(p["conv1_b"].reshape(1, -1), (1, LANES)).astype(jnp.float32),
        "c2_w": _conv_wmat(p["conv2_w"]),
        "c2_b": _pad_to(p["conv2_b"].reshape(1, -1), (1, LANES)).astype(jnp.float32),
    }
    # fc1: permute input rows once so the NHWC (h, w, c) flatten of the pooled
    # conv2 output matches PyTorch's NCHW (c, h, w) flatten -> no act transpose.
    perm = jnp.transpose(jnp.arange(400).reshape(16, 5, 5), (1, 2, 0)).reshape(-1)
    w1 = p["fc1_w"].T[perm, :]                                   # (400, 120)
    kp["fc1_w"] = _pad_to(w1, (400, LANES)).astype(CDTYPE)
    kp["fc1_b"] = _pad_to(p["fc1_b"].reshape(1, -1), (1, LANES)).astype(jnp.float32)
    kp["fc2_w"] = _pad_to(p["fc2_w"].T, (LANES, LANES)).astype(CDTYPE)
    kp["fc2_b"] = _pad_to(p["fc2_b"].reshape(1, -1), (1, LANES)).astype(jnp.float32)
    kp["fc3_w"] = _pad_to(p["fc3_w"].T, (LANES, LANES)).astype(CDTYPE)
    kp["fc3_b"] = _pad_to(p["fc3_b"].reshape(1, -1), (1, LANES)).astype(jnp.float32)
    return kp


# ----------------------------------------------------------------------------
# Forward pass (matches Net_cifar10.forward)
# ----------------------------------------------------------------------------
@jax.jit
def net_cifar10_forward(kp, x_nchw):
    x = jnp.transpose(x_nchw, (0, 2, 3, 1))                       # NHWC once at entry
    x = conv_relu_pool(x, kp["c1_w"], kp["c1_b"], cout=6)          # (B, 14, 14, 6)
    x = conv_relu_pool(x, kp["c2_w"], kp["c2_b"], cout=16)         # (B, 5, 5, 16)
    B = x.shape[0]
    x = x.reshape(B, 16 * 5 * 5)                                   # NHWC flatten (fc1 pre-permuted)
    logits = mlp3(x, kp["fc1_w"], kp["fc1_b"],
                  kp["fc2_w"], kp["fc2_b"],
                  kp["fc3_w"], kp["fc3_b"])                        # (B, 128) f32
    return logits[:, :10]


# ----------------------------------------------------------------------------
# Pure-JAX f32 reference (PyTorch semantics, NCHW) for correctness check
# ----------------------------------------------------------------------------
def reference_forward(p, x):
    def conv(x, w, b):
        y = jax.lax.conv_general_dilated(
            x, w, window_strides=(1, 1), padding="VALID",
            dimension_numbers=("NCHW", "OIHW", "NCHW"))
        return jax.nn.relu(y + b[None, :, None, None])

    def pool(x):
        B, C, H, W = x.shape
        return jnp.max(x.reshape(B, C, H // 2, 2, W // 2, 2), axis=(3, 5))

    x = pool(conv(x, p["conv1_w"], p["conv1_b"]))
    x = pool(conv(x, p["conv2_w"], p["conv2_b"]))
    x = x.reshape(x.shape[0], -1)                                  # NCHW flatten
    x = jax.nn.relu(x @ p["fc1_w"].T + p["fc1_b"])
    x = jax.nn.relu(x @ p["fc2_w"].T + p["fc2_b"])
    return x @ p["fc3_w"].T + p["fc3_b"]


if __name__ == "__main__":
    key = jax.random.PRNGKey(0)
    pkey, xkey = jax.random.split(key)
    params = init_params(pkey)
    kparams = prepare_params(params)
    # CIFAR-10 spatial (32x32) is required for the 16*5*5 flatten to hold.
    x = jax.random.normal(xkey, (2, 3, 32, 32), jnp.float32)

    out = jax.block_until_ready(net_cifar10_forward(kparams, x))
    ref = reference_forward(params, x)

    assert out.shape == (2, 10)
    max_err = float(jnp.max(jnp.abs(out - ref)))
    # bf16 MXU inputs with f32 accumulation -> tolerance sized for bf16.
    assert jnp.allclose(out, ref, atol=2e-2, rtol=2e-2), f"mismatch vs reference (max abs err {max_err})"
    print("KERNEL_OK")
</pallas_src>

<mosaic_0001>
module attributes {stable_mosaic.version = 11 : i64} {
  func.func @_conv_relu_pool_kernel(%arg0: i32, %arg1: memref<4x200x128xbf16, #tpu.memory_space<vmem>>, %arg2: memref<128x128xbf16, #tpu.memory_space<vmem>>, %arg3: memref<1x128xf32, #tpu.memory_space<vmem>>, %arg4: memref<200x128xbf16, #tpu.memory_space<vmem>>) attributes {dimension_semantics = [#tpu.dimension_semantics<parallel>], iteration_bounds = array<i64: 2>, scalar_prefetch = 0 : i64, scratch_operands = 0 : i64, tpu.core_type = #tpu.core_type<tc>, window_params = [{transform_indices = @transform_0, window_bounds = array<i64: 4, 200, 128>}, {pipeline_mode = #tpu.pipeline_mode<synchronous>, transform_indices = @transform_1, window_bounds = array<i64: 128, 128>}, {pipeline_mode = #tpu.pipeline_mode<synchronous>, transform_indices = @transform_2, window_bounds = array<i64: 1, 128>}, {transform_indices = @transform_3, window_bounds = array<i64: 200, 128>}]} {
    %c0 = arith.constant 0 : index
    %c0_0 = arith.constant 0 : index
    %0 = vector.load %arg2[%c0, %c0_0] : memref<128x128xbf16, #tpu.memory_space<vmem>>, vector<128x128xbf16>
    %c0_1 = arith.constant 0 : index
    %c0_2 = arith.constant 0 : index
    %c0_3 = arith.constant 0 : index
    %1 = vector.load %arg1[%c0_1, %c0_2, %c0_3] : memref<4x200x128xbf16, #tpu.memory_space<vmem>>, vector<1x200x128xbf16>
    %2 = vector.shape_cast %1 : vector<1x200x128xbf16> to vector<200x128xbf16>
    %cst = arith.constant dense<0.000000e+00> : vector<200x128xf32>
    %3 = tpu.matmul %2, %0, %cst {dimension_numbers = #tpu.dot_dimension_numbers<[1], [0], [0], [1], [0, 0, 1, 1], [], []>} : vector<200x128xbf16>, vector<128x128xbf16>, vector<200x128xf32> -> vector<200x128xf32>
    %c1 = arith.constant 1 : index
    %c0_4 = arith.constant 0 : index
    %c0_5 = arith.constant 0 : index
    %4 = vector.load %arg1[%c1, %c0_4, %c0_5] : memref<4x200x128xbf16, #tpu.memory_space<vmem>>, vector<1x200x128xbf16>
    %5 = vector.shape_cast %4 : vector<1x200x128xbf16> to vector<200x128xbf16>
    %cst_6 = arith.constant dense<0.000000e+00> : vector<200x128xf32>
    %6 = tpu.matmul %5, %0, %cst_6 {dimension_numbers = #tpu.dot_dimension_numbers<[1], [0], [0], [1], [0, 0, 1, 1], [], []>} : vector<200x128xbf16>, vector<128x128xbf16>, vector<200x128xf32> -> vector<200x128xf32>
    %c2 = arith.constant 2 : index
    %c0_7 = arith.constant 0 : index
    %c0_8 = arith.constant 0 : index
    %7 = vector.load %arg1[%c2, %c0_7, %c0_8] : memref<4x200x128xbf16, #tpu.memory_space<vmem>>, vector<1x200x128xbf16>
    %8 = vector.shape_cast %7 : vector<1x200x128xbf16> to vector<200x128xbf16>
    %cst_9 = arith.constant dense<0.000000e+00> : vector<200x128xf32>
    %9 = tpu.matmul %8, %0, %cst_9 {dimension_numbers = #tpu.dot_dimension_numbers<[1], [0], [0], [1], [0, 0, 1, 1], [], []>} : vector<200x128xbf16>, vector<128x128xbf16>, vector<200x128xf32> -> vector<200x128xf32>
    %c3 = arith.constant 3 : index
    %c0_10 = arith.constant 0 : index
    %c0_11 = arith.constant 0 : index
    %10 = vector.load %arg1[%c3, %c0_10, %c0_11] : memref<4x200x128xbf16, #tpu.memory_space<vmem>>, vector<1x200x128xbf16>
    %11 = vector.shape_cast %10 : vector<1x200x128xbf16> to vector<200x128xbf16>
    %cst_12 = arith.constant dense<0.000000e+00> : vector<200x128xf32>
    %12 = tpu.matmul %11, %0, %cst_12 {dimension_numbers = #tpu.dot_dimension_numbers<[1], [0], [0], [1], [0, 0, 1, 1], [], []>} : vector<200x128xbf16>, vector<128x128xbf16>, vector<200x128xf32> -> vector<200x128xf32>
    %13 = arith.maximumf %3, %6 : vector<200x128xf32>
    %14 = arith.maximumf %9, %12 : vector<200x128xf32>
    %15 = arith.maximumf %13, %14 : vector<200x128xf32>
    %c0_13 = arith.constant 0 : index
    %c0_14 = arith.constant 0 : index
    %16 = vector.load %arg3[%c0_13, %c0_14] : memref<1x128xf32, #tpu.memory_space<vmem>>, vector<1x128xf32>
    %17 = vector.broadcast %16 : vector<1x128xf32> to vector<200x128xf32>
    %18 = arith.addf %15, %17 : vector<200x128xf32>
    %cst_15 = arith.constant 0.000000e+00 : f32
    %19 = vector.broadcast %cst_15 : f32 to vector<200x128xf32>
    %20 = arith.maximumf %18, %19 : vector<200x128xf32>
    %21 = arith.truncf %20 : vector<200x128xf32> to vector<200x128xbf16>
    %c0_16 = arith.constant 0 : index
    %c0_17 = arith.constant 0 : index
    %22 = vector.load %arg4[%c0_16, %c0_17] : memref<200x128xbf16, #tpu.memory_space<vmem>>, vector<200x128xbf16>
    tpu.vector_store %arg4[%c0_16, %c0_17], %21 {strides = array<i32>} : memref<200x128xbf16, #tpu.memory_space<vmem>>, vector<200x128xbf16>,
    return
  }
  func.func @transform_0(%arg0: i32) -> (i32, i32, i32) {
    %c0_i32 = arith.constant 0 : i32
    %c0_i32_0 = arith.constant 0 : i32
    %c0_i32_1 = arith.constant 0 : i32
    return %c0_i32, %arg0, %c0_i32_0 : i32, i32, i32
  }
  func.func @transform_1(%arg0: i32) -> (i32, i32) {
    %c0_i32 = arith.constant 0 : i32
    %c0_i32_0 = arith.constant 0 : i32
    %c0_i32_1 = arith.constant 0 : i32
    return %c0_i32, %c0_i32_0 : i32, i32
  }
  func.func @transform_2(%arg0: i32) -> (i32, i32) {
    %c0_i32 = arith.constant 0 : i32
    %c0_i32_0 = arith.constant 0 : i32
    %c0_i32_1 = arith.constant 0 : i32
    return %c0_i32, %c0_i32_0 : i32, i32
  }
  func.func @transform_3(%arg0: i32) -> (i32, i32) {
    %c0_i32 = arith.constant 0 : i32
    %c0_i32_0 = arith.constant 0 : i32
    return %arg0, %c0_i32 : i32, i32
  }
}

module attributes {stable_mosaic.version = 11 : i64} {
  func.func @_conv_relu_pool_kernel(%arg0: i32, %arg1: memref<4x32x256xbf16, #tpu.memory_space<vmem>>, %arg2: memref<256x128xbf16, #tpu.memory_space<vmem>>, %arg3: memref<1x128xf32, #tpu.memory_space<vmem>>, %arg4: memref<32x128xbf16, #tpu.memory_space<vmem>>) attributes {dimension_semantics = [#tpu.dimension_semantics<parallel>], iteration_bounds = array<i64: 2>, scalar_prefetch = 0 : i64, scratch_operands = 0 : i64, tpu.core_type = #tpu.core_type<tc>, window_params = [{transform_indices = @transform_0, window_bounds = array<i64: 4, 32, 256>}, {pipeline_mode = #tpu.pipeline_mode<synchronous>, transform_indices = @transform_1, window_bounds = array<i64: 256, 128>}, {pipeline_mode = #tpu.pipeline_mode<synchronous>, transform_indices = @transform_2, window_bounds = array<i64: 1, 128>}, {transform_indices = @transform_3, window_bounds = array<i64: 32, 128>}]} {
    %c0 = arith.constant 0 : index
    %c0_0 = arith.constant 0 : index
    %0 = vector.load %arg2[%c0, %c0_0] : memref<256x128xbf16, #tpu.memory_space<vmem>>, vector<256x128xbf16>
    %c0_1 = arith.constant 0 : index
    %c0_2 = arith.constant 0 : index
    %c0_3 = arith.constant 0 : index
    %1 = vector.load %arg1[%c0_1, %c0_2, %c0_3] : memref<4x32x256xbf16, #tpu.memory_space<vmem>>, vector<1x32x256xbf16>
    %2 = vector.shape_cast %1 : vector<1x32x256xbf16> to vector<32x256xbf16>
    %cst = arith.constant dense<0.000000e+00> : vector<32x128xf32>
    %3 = tpu.matmul %2, %0, %cst {dimension_numbers = #tpu.dot_dimension_numbers<[1], [0], [0], [1], [0, 0, 1, 1], [], []>} : vector<32x256xbf16>, vector<256x128xbf16>, vector<32x128xf32> -> vector<32x128xf32>
    %c1 = arith.constant 1 : index
    %c0_4 = arith.constant 0 : index
    %c0_5 = arith.constant 0 : index
    %4 = vector.load %arg1[%c1, %c0_4, %c0_5] : memref<4x32x256xbf16, #tpu.memory_space<vmem>>, vector<1x32x256xbf16>
    %5 = vector.shape_cast %4 : vector<1x32x256xbf16> to vector<32x256xbf16>
    %cst_6 = arith.constant dense<0.000000e+00> : vector<32x128xf32>
    %6 = tpu.matmul %5, %0, %cst_6 {dimension_numbers = #tpu.dot_dimension_numbers<[1], [0], [0], [1], [0, 0, 1, 1], [], []>} : vector<32x256xbf16>, vector<256x128xbf16>, vector<32x128xf32> -> vector<32x128xf32>
    %c2 = arith.constant 2 : index
    %c0_7 = arith.constant 0 : index
    %c0_8 = arith.constant 0 : index
    %7 = vector.load %arg1[%c2, %c0_7, %c0_8] : memref<4x32x256xbf16, #tpu.memory_space<vmem>>, vector<1x32x256xbf16>
    %8 = vector.shape_cast %7 : vector<1x32x256xbf16> to vector<32x256xbf16>
    %cst_9 = arith.constant dense<0.000000e+00> : vector<32x128xf32>
    %9 = tpu.matmul %8, %0, %cst_9 {dimension_numbers = #tpu.dot_dimension_numbers<[1], [0], [0], [1], [0, 0, 1, 1], [], []>} : vector<32x256xbf16>, vector<256x128xbf16>, vector<32x128xf32> -> vector<32x128xf32>
    %c3 = arith.constant 3 : index
    %c0_10 = arith.constant 0 : index
    %c0_11 = arith.constant 0 : index
    %10 = vector.load %arg1[%c3, %c0_10, %c0_11] : memref<4x32x256xbf16, #tpu.memory_space<vmem>>, vector<1x32x256xbf16>
    %11 = vector.shape_cast %10 : vector<1x32x256xbf16> to vector<32x256xbf16>
    %cst_12 = arith.constant dense<0.000000e+00> : vector<32x128xf32>
    %12 = tpu.matmul %11, %0, %cst_12 {dimension_numbers = #tpu.dot_dimension_numbers<[1], [0], [0], [1], [0, 0, 1, 1], [], []>} : vector<32x256xbf16>, vector<256x128xbf16>, vector<32x128xf32> -> vector<32x128xf32>
    %13 = arith.maximumf %3, %6 : vector<32x128xf32>
    %14 = arith.maximumf %9, %12 : vector<32x128xf32>
    %15 = arith.maximumf %13, %14 : vector<32x128xf32>
    %c0_13 = arith.constant 0 : index
    %c0_14 = arith.constant 0 : index
    %16 = vector.load %arg3[%c0_13, %c0_14] : memref<1x128xf32, #tpu.memory_space<vmem>>, vector<1x128xf32>
    %17 = vector.broadcast %16 : vector<1x128xf32> to vector<32x128xf32>
    %18 = arith.addf %15, %17 : vector<32x128xf32>
    %cst_15 = arith.constant 0.000000e+00 : f32
    %19 = vector.broadcast %cst_15 : f32 to vector<32x128xf32>
    %20 = arith.maximumf %18, %19 : vector<32x128xf32>
    %21 = arith.truncf %20 : vector<32x128xf32> to vector<32x128xbf16>
    %c0_16 = arith.constant 0 : index
    %c0_17 = arith.constant 0 : index
    %22 = vector.load %arg4[%c0_16, %c0_17] : memref<32x128xbf16, #tpu.memory_space<vmem>>, vector<32x128xbf16>
    tpu.vector_store %arg4[%c0_16, %c0_17], %21 {strides = array<i32>} : memref<32x128xbf16, #tpu.memory_space<vmem>>, vector<32x128xbf16>,
    return
  }
  func.func @transform_0(%arg0: i32) -> (i32, i32, i32) {
    %c0_i32 = arith.constant 0 : i32
    %c0_i32_0 = arith.constant 0 : i32
    %c0_i32_1 = arith.constant 0 : i32
    return %c0_i32, %arg0, %c0_i32_0 : i32, i32, i32
  }
  func.func @transform_1(%arg0: i32) -> (i32, i32) {
    %c0_i32 = arith.constant 0 : i32
    %c0_i32_0 = arith.constant 0 : i32
    %c0_i32_1 = arith.constant 0 : i32
    return %c0_i32, %c0_i32_0 : i32, i32
  }
  func.func @transform_2(%arg0: i32) -> (i32, i32) {
    %c0_i32 = arith.constant 0 : i32
    %c0_i32_0 = arith.constant 0 : i32
    %c0_i32_1 = arith.constant 0 : i32
    return %c0_i32, %c0_i32_0 : i32, i32
  }
  func.func @transform_3(%arg0: i32) -> (i32, i32) {
    %c0_i32 = arith.constant 0 : i32
    %c0_i32_0 = arith.constant 0 : i32
    return %arg0, %c0_i32 : i32, i32
  }
}

module attributes {stable_mosaic.version = 11 : i64} {
  func.func @_mlp3_kernel(%arg0: i32, %arg1: memref<8x400xbf16, #tpu.memory_space<vmem>>, %arg2: memref<400x128xbf16, #tpu.memory_space<vmem>>, %arg3: memref<1x128xf32, #tpu.memory_space<vmem>>, %arg4: memref<128x128xbf16, #tpu.memory_space<vmem>>, %arg5: memref<1x128xf32, #tpu.memory_space<vmem>>, %arg6: memref<128x128xbf16, #tpu.memory_space<vmem>>, %arg7: memref<1x128xf32, #tpu.memory_space<vmem>>, %arg8: memref<8x128xf32, #tpu.memory_space<vmem>>) attributes {dimension_semantics = [#tpu.dimension_semantics<parallel>], iteration_bounds = array<i64: 1>, scalar_prefetch = 0 : i64, scratch_operands = 0 : i64, tpu.core_type = #tpu.core_type<tc>, window_params = [{transform_indices = @transform_0, window_bounds = array<i64: 8, 400>}, {pipeline_mode = #tpu.pipeline_mode<synchronous>, transform_indices = @transform_1, window_bounds = array<i64: 400, 128>}, {pipeline_mode = #tpu.pipeline_mode<synchronous>, transform_indices = @transform_2, window_bounds = array<i64: 1, 128>}, {pipeline_mode = #tpu.pipeline_mode<synchronous>, transform_indices = @transform_3, window_bounds = array<i64: 128, 128>}, {pipeline_mode = #tpu.pipeline_mode<synchronous>, transform_indices = @transform_4, window_bounds = array<i64: 1, 128>}, {pipeline_mode = #tpu.pipeline_mode<synchronous>, transform_indices = @transform_5, window_bounds = array<i64: 128, 128>}, {pipeline_mode = #tpu.pipeline_mode<synchronous>, transform_indices = @transform_6, window_bounds = array<i64: 1, 128>}, {transform_indices = @transform_7, window_bounds = array<i64: 8, 128>}]} {
    %c0 = arith.constant 0 : index
    %c0_0 = arith.constant 0 : index
    %0 = vector.load %arg1[%c0, %c0_0] : memref<8x400xbf16, #tpu.memory_space<vmem>>, vector<8x400xbf16>
    %c0_1 = arith.constant 0 : index
    %c0_2 = arith.constant 0 : index
    %1 = vector.load %arg2[%c0_1, %c0_2] : memref<400x128xbf16, #tpu.memory_space<vmem>>, vector<400x128xbf16>
    %cst = arith.constant dense<0.000000e+00> : vector<8x128xf32>
    %2 = tpu.matmul %0, %1, %cst {dimension_numbers = #tpu.dot_dimension_numbers<[1], [0], [0], [1], [0, 0, 1, 1], [], []>} : vector<8x400xbf16>, vector<400x128xbf16>, vector<8x128xf32> -> vector<8x128xf32>
    %c0_3 = arith.constant 0 : index
    %c0_4 = arith.constant 0 : index
    %3 = vector.load %arg3[%c0_3, %c0_4] : memref<1x128xf32, #tpu.memory_space<vmem>>, vector<1x128xf32>
    %4 = vector.broadcast %3 : vector<1x128xf32> to vector<8x128xf32>
    %5 = arith.addf %2, %4 : vector<8x128xf32>
    %cst_5 = arith.constant 0.000000e+00 : f32
    %6 = vector.broadcast %cst_5 : f32 to vector<8x128xf32>
    %7 = arith.maximumf %5, %6 : vector<8x128xf32>
    %8 = arith.truncf %7 : vector<8x128xf32> to vector<8x128xbf16>
    %c0_6 = arith.constant 0 : index
    %c0_7 = arith.constant 0 : index
    %9 = vector.load %arg4[%c0_6, %c0_7] : memref<128x128xbf16, #tpu.memory_space<vmem>>, vector<128x128xbf16>
    %cst_8 = arith.constant dense<0.000000e+00> : vector<8x128xf32>
    %10 = tpu.matmul %8, %9, %cst_8 {dimension_numbers = #tpu.dot_dimension_numbers<[1], [0], [0], [1], [0, 0, 1, 1], [], []>} : vector<8x128xbf16>, vector<128x128xbf16>, vector<8x128xf32> -> vector<8x128xf32>
    %c0_9 = arith.constant 0 : index
    %c0_10 = arith.constant 0 : index
    %11 = vector.load %arg5[%c0_9, %c0_10] : memref<1x128xf32, #tpu.memory_space<vmem>>, vector<1x128xf32>
    %12 = vector.broadcast %11 : vector<1x128xf32> to vector<8x128xf32>
    %13 = arith.addf %10, %12 : vector<8x128xf32>
    %cst_11 = arith.constant 0.000000e+00 : f32
    %14 = vector.broadcast %cst_11 : f32 to vector<8x128xf32>
    %15 = arith.maximumf %13, %14 : vector<8x128xf32>
    %16 = arith.truncf %15 : vector<8x128xf32> to vector<8x128xbf16>
    %c0_12 = arith.constant 0 : index
    %c0_13 = arith.constant 0 : index
    %17 = vector.load %arg6[%c0_12, %c0_13] : memref<128x128xbf16, #tpu.memory_space<vmem>>, vector<128x128xbf16>
    %cst_14 = arith.constant dense<0.000000e+00> : vector<8x128xf32>
    %18 = tpu.matmul %16, %17, %cst_14 {dimension_numbers = #tpu.dot_dimension_numbers<[1], [0], [0], [1], [0, 0, 1, 1], [], []>} : vector<8x128xbf16>, vector<128x128xbf16>, vector<8x128xf32> -> vector<8x128xf32>
    %c0_15 = arith.constant 0 : index
    %c0_16 = arith.constant 0 : index
    %19 = vector.load %arg7[%c0_15, %c0_16] : memref<1x128xf32, #tpu.memory_space<vmem>>, vector<1x128xf32>
    %20 = vector.broadcast %19 : vector<1x128xf32> to vector<8x128xf32>
    %21 = arith.addf %18, %20 : vector<8x128xf32>
    %c0_17 = arith.constant 0 : index
    %c0_18 = arith.constant 0 : index
    %22 = vector.load %arg8[%c0_17, %c0_18] : memref<8x128xf32, #tpu.memory_space<vmem>>, vector<8x128xf32>
    tpu.vector_store %arg8[%c0_17, %c0_18], %21 {strides = array<i32>} : memref<8x128xf32, #tpu.memory_space<vmem>>, vector<8x128xf32>,
    return
  }
  func.func @transform_0(%arg0: i32) -> (i32, i32) {
    %c0_i32 = arith.constant 0 : i32
    %c0_i32_0 = arith.constant 0 : i32
    return %arg0, %c0_i32 : i32, i32
  }
  func.func @transform_1(%arg0: i32) -> (i32, i32) {
    %c0_i32 = arith.constant 0 : i32
    %c0_i32_0 = arith.constant 0 : i32
    %c0_i32_1 = arith.constant 0 : i32
    return %c0_i32, %c0_i32_0 : i32, i32
  }
  func.func @transform_2(%arg0: i32) -> (i32, i32) {
    %c0_i32 = arith.constant 0 : i32
    %c0_i32_0 = arith.constant 0 : i32
    %c0_i32_1 = arith.constant 0 : i32
    return %c0_i32, %c0_i32_0 : i32, i32
  }
  func.func @transform_3(%arg0: i32) -> (i32, i32) {
    %c0_i32 = arith.constant 0 : i32
    %c0_i32_0 = arith.constant 0 : i32
    %c0_i32_1 = arith.constant 0 : i32
    return %c0_i32, %c0_i32_0 : i32, i32
  }
  func.func @transform_4(%arg0: i32) -> (i32, i32) {
    %c0_i32 = arith.constant 0 : i32
    %c0_i32_0 = arith.constant 0 : i32
    %c0_i32_1 = arith.constant 0 : i32
    return %c0_i32, %c0_i32_0 : i32, i32
  }
  func.func @transform_5(%arg0: i32) -> (i32, i32) {
    %c0_i32 = arith.constant 0 : i32
    %c0_i32_0 = arith.constant 0 : i32
    %c0_i32_1 = arith.constant 0 : i32
    return %c0_i32, %c0_i32_0 : i32, i32
  }
  func.func @transform_6(%arg0: i32) -> (i32, i32) {
    %c0_i32 = arith.constant 0 : i32
    %c0_i32_0 = arith.constant 0 : i32
    %c0_i32_1 = arith.constant 0 : i32
    return %c0_i32, %c0_i32_0 : i32, i32
  }
  func.func @transform_7(%arg0: i32) -> (i32, i32) {
    %c0_i32 = arith.constant 0 : i32
    %c0_i32_0 = arith.constant 0 : i32
    return %arg0, %c0_i32 : i32, i32
  }
}

</mosaic_0001>

<bundles_post_ra>
// kernel: net_cifar10_forward.3
= control target key start
LH: loop header
LB: loop body
LE: loop exit
PB: predicated region body
PF: predicated region fallthrough
CT: control target
= control target key end

     0   :  { %s2704_s12 = smov 0   ;;  %s2706_s13 = smov 0   ;;  %s3348_s0 = inlined_call_operand.vmem [shape: bf16[4,400,128], index: 0, kind: input, shape index: {}]   ;;  %s3349_s1 = inlined_call_operand.vmem [shape: bf16[128,128], index: 1, kind: input, shape index: {}]   ;;  %s3350_s2 = inlined_call_operand.vmem [shape: f32[1,128], index: 2, kind: input, shape index: {}]   ;;  %s3351_s3 = inlined_call_operand.vmem [shape: bf16[400,128], index: 3, kind: output, shape index: {}]  }
   0x1   :  { %s2708_s14 = smov 0  }
   0x2 LB: > { %s1947_s15 = sadd.s32 4294967295, %s2680_s14   ;;  %s2721_s16 = sadd.s32 1, %s2680_s14   ;;  %s2680_s14 = sphi %s2708_s14, %s3390_s14   ;;  %s2676_s13 = sphi %s2706_s13, %s3389_s13   ;;  %s2672_s12 = sphi %s2704_s12, %s3388_s12  }
   0x3   : > { %s17_s17 = ssub.s32 %s2680_s14, %s2721_s16  ;;  %s20_s18 = sadd.s32 1, %s2676_s13 }
   0x4   : > { %p18_p0 = scmp.eq.s32.totalorder %s17_s17, 0  ;;  %p27_p1 = scmp.ne.s32.totalorder %s2676_s13, %s2672_s12 }
   0x5   : > { %p28_p2 = scmp.eq.s32.totalorder %s2680_s14, 0  ;;  %p1950_p4 = scmp.ge.s32.totalorder %s2680_s14, 2 }
   0x6   : > { %s2730_s19 = scalar_select %p18_p0, %s2676_s13, %s20_s18  }
   0x7   : > { %p29_p3 = por %p28_p2, %p27_p1  ;;  %127 = sbr.rel (%p1950_p4) target bundleno = 45 (0x2d), region = 24 }
   0xe   : > { %130 = sbr.rel (!%p29_p3) target bundleno = 45 (0x2d), region = 28  ;;  %s132_s20 = sand.u32 (%p29_p3), 1, %s2676_s13  }
   0xf   : > { %s2117_s21 = smul.u32 (%p29_p3), 100, %s2680_s14 }
  0x10   : > { %s2570_s22 = smul.u32 (%p29_p3), 400, %s132_s20 }
  0x11   : > { %s2738_s25 = scalar_lea.vmem (%p29_p3), %s3348_s0, %s2117_s21 }
  0x12   : > { %v153_v0 = vld [vmem:[%s2738_s25] sm:$0xff] (%p29_p3)   ;;  %v157_v1 = vld [vmem:[%s2738_s25 + $0x8] sm:$0xff] (%p29_p3)   ;;  %v161_v2 = vld [vmem:[%s2738_s25 + $0x10] sm:$0xff] (%p29_p3)   ;;  %s2743_s26 = scalar_lea.vmem (%p29_p3), [#allocation2], %s2570_s22 }
  0x13   : > { %154 = vst [vmem:[%s2743_s26] sm:$0xff] (%p29_p3), %v153_v0   ;;  %158 = vst [vmem:[%s2743_s26 + $0x8] sm:$0xff] (%p29_p3), %v157_v1   ;;  %v165_v3 = vld [vmem:[%s2738_s25 + $0x18] sm:$0xff] (%p29_p3)   ;;  %v169_v4 = vld [vmem:[%s2738_s25 + $0x20] sm:$0xff] (%p29_p3)  }
  0x14   : > { %162 = vst [vmem:[%s2743_s26 + $0x10] sm:$0xff] (%p29_p3), %v161_v2   ;;  %v173_v5 = vld [vmem:[%s2738_s25 + $0x28] sm:$0xff] (%p29_p3)   ;;  %166 = vst [vmem:[%s2743_s26 + $0x18] sm:$0xff] (%p29_p3), %v165_v3   ;;  %v177_v6 = vld [vmem:[%s2738_s25 + $0x30] sm:$0xff] (%p29_p3)  }
  0x15   : > { %170 = vst [vmem:[%s2743_s26 + $0x20] sm:$0xff] %v169_v4   ;;  %174 = vst [vmem:[%s2743_s26 + $0x28] sm:$0xff] %v173_v5   ;;  %v181_v7 = vld [vmem:[%s2738_s25 + $0x38] sm:$0xff]   ;;  %v185_v8 = vld [vmem:[%s2738_s25 + $0x40] sm:$0xff]  }
  0x16   : > { %178 = vst [vmem:[%s2743_s26 + $0x30] sm:$0xff] %v177_v6   ;;  %182 = vst [vmem:[%s2743_s26 + $0x38] sm:$0xff] %v181_v7   ;;  %v189_v9 = vld [vmem:[%s2738_s25 + $0x48] sm:$0xff]   ;;  %v193_v10 = vld [vmem:[%s2738_s25 + $0x50] sm:$0xff]  }
  0x17   : > { %186 = vst [vmem:[%s2743_s26 + $0x40] sm:$0xff] %v185_v8   ;;  %v197_v11 = vld [vmem:[%s2738_s25 + $0x58] sm:$0xff]   ;;  %190 = vst [vmem:[%s2743_s26 + $0x48] sm:$0xff] %v189_v9   ;;  %v201_v12 = vld [vmem:[%s2738_s25 + $0x60] sm:$0xf] }
  0x18   : > { %194 = vst [vmem:[%s2743_s26 + $0x50] sm:$0xff] %v193_v10   ;;  %198 = vst [vmem:[%s2743_s26 + $0x58] sm:$0xff] %v197_v11   ;;  %v203_v13 = vld [vmem:[%s2738_s25 + $0xc8] sm:$0xff]   ;;  %v207_v14 = vld [vmem:[%s2738_s25 + $0xd0] sm:$0xff]  }
  0x19   : > { %202 = vst [vmem:[%s2743_s26 + $0x60] sm:$0xf] %v201_v12  ;;  %204 = vst [vmem:[%s2743_s26 + $0x64] sm:$0xff] %v203_v13   ;;  %v211_v15 = vld [vmem:[%s2738_s25 + $0xd8] sm:$0xff]   ;;  %v215_v16 = vld [vmem:[%s2738_s25 + $0xe0] sm:$0xff]  }
  0x1a   : > { %208 = vst [vmem:[%s2743_s26 + $0x6c] sm:$0xff] %v207_v14   ;;  %v219_v17 = vld [vmem:[%s2738_s25 + $0xe8] sm:$0xff]   ;;  %212 = vst [vmem:[%s2743_s26 + $0x74] sm:$0xff] %v211_v15   ;;  %v223_v18 = vld [vmem:[%s2738_s25 + $0xf0] sm:$0xff]  }
  0x1b   : > { %216 = vst [vmem:[%s2743_s26 + $0x7c] sm:$0xff] %v215_v16   ;;  %220 = vst [vmem:[%s2743_s26 + $0x84] sm:$0xff] %v219_v17   ;;  %v227_v19 = vld [vmem:[%s2738_s25 + $0xf8] sm:$0xff]   ;;  %v231_v20 = vld [vmem:[%s2738_s25 + $0x100] sm:$0xff]  }
  0x1c   : > { %224 = vst [vmem:[%s2743_s26 + $0x8c] sm:$0xff] %v223_v18   ;;  %228 = vst [vmem:[%s2743_s26 + $0x94] sm:$0xff] %v227_v19   ;;  %v235_v21 = vld [vmem:[%s2738_s25 + $0x108] sm:$0xff]   ;;  %v239_v22 = vld [vmem:[%s2738_s25 + $0x110] sm:$0xff]  }
  0x1d   : > { %232 = vst [vmem:[%s2743_s26 + $0x9c] sm:$0xff] %v231_v20   ;;  %v243_v23 = vld [vmem:[%s2738_s25 + $0x118] sm:$0xff]   ;;  %236 = vst [vmem:[%s2743_s26 + $0xa4] sm:$0xff] %v235_v21   ;;  %v247_v24 = vld [vmem:[%s2738_s25 + $0x120] sm:$0xff]  }
  0x1e   : > { %240 = vst [vmem:[%s2743_s26 + $0xac] sm:$0xff] %v239_v22   ;;  %244 = vst [vmem:[%s2743_s26 + $0xb4] sm:$0xff] %v243_v23   ;;  %v251_v25 = vld [vmem:[%s2738_s25 + $0x128] sm:$0xf]  ;;  %v253_v26 = vld [vmem:[%s2738_s25 + $0x190] sm:$0xff]  }
  0x1f   : > { %248 = vst [vmem:[%s2743_s26 + $0xbc] sm:$0xff] %v247_v24   ;;  %252 = vst [vmem:[%s2743_s26 + $0xc4] sm:$0xf] %v251_v25  ;;  %v257_v27 = vld [vmem:[%s2738_s25 + $0x198] sm:$0xff]   ;;  %v261_v28 = vld [vmem:[%s2738_s25 + $0x1a0] sm:$0xff]  }
  0x20   : > { %254 = vst [vmem:[%s2743_s26 + $0xc8] sm:$0xff] %v253_v26   ;;  %v265_v29 = vld [vmem:[%s2738_s25 + $0x1a8] sm:$0xff]   ;;  %258 = vst [vmem:[%s2743_s26 + $0xd0] sm:$0xff] %v257_v27   ;;  %v269_v30 = vld [vmem:[%s2738_s25 + $0x1b0] sm:$0xff]  }
  0x21   : > { %262 = vst [vmem:[%s2743_s26 + $0xd8] sm:$0xff] %v261_v28   ;;  %266 = vst [vmem:[%s2743_s26 + $0xe0] sm:$0xff] %v265_v29   ;;  %v273_v31 = vld [vmem:[%s2738_s25 + $0x1b8] sm:$0xff]   ;;  %v277_v32 = vld [vmem:[%s2738_s25 + $0x1c0] sm:$0xff]  }
  0x22   : > { %270 = vst [vmem:[%s2743_s26 + $0xe8] sm:$0xff] %v269_v30   ;;  %274 = vst [vmem:[%s2743_s26 + $0xf0] sm:$0xff] %v273_v31   ;;  %v281_v33 = vld [vmem:[%s2738_s25 + $0x1c8] sm:$0xff]   ;;  %v285_v34 = vld [vmem:[%s2738_s25 + $0x1d0] sm:$0xff]  }
  0x23   : > { %278 = vst [vmem:[%s2743_s26 + $0xf8] sm:$0xff] %v277_v32   ;;  %v289_v35 = vld [vmem:[%s2738_s25 + $0x1d8] sm:$0xff]   ;;  %282 = vst [vmem:[%s2743_s26 + $0x100] sm:$0xff] %v281_v33   ;;  %v293_v36 = vld [vmem:[%s2738_s25 + $0x1e0] sm:$0xff]  }
  0x24   : > { %286 = vst [vmem:[%s2743_s26 + $0x108] sm:$0xff] %v285_v34   ;;  %290 = vst [vmem:[%s2743_s26 + $0x110] sm:$0xff] %v289_v35   ;;  %v297_v37 = vld [vmem:[%s2738_s25 + $0x1e8] sm:$0xff]   ;;  %v301_v38 = vld [vmem:[%s2738_s25 + $0x1f0] sm:$0xf] }
  0x25   : > { %294 = vst [vmem:[%s2743_s26 + $0x118] sm:$0xff] %v293_v36   ;;  %298 = vst [vmem:[%s2743_s26 + $0x120] sm:$0xff] %v297_v37   ;;  %v303_v39 = vld [vmem:[%s2738_s25 + $0x258] sm:$0xff]   ;;  %v307_v40 = vld [vmem:[%s2738_s25 + $0x260] sm:$0xff]  }
  0x26   : > { %302 = vst [vmem:[%s2743_s26 + $0x128] sm:$0xf] %v301_v38  ;;  %v311_v41 = vld [vmem:[%s2738_s25 + $0x268] sm:$0xff]   ;;  %304 = vst [vmem:[%s2743_s26 + $0x12c] sm:$0xff] %v303_v39   ;;  %v315_v42 = vld [vmem:[%s2738_s25 + $0x270] sm:$0xff]  }
  0x27   : > { %308 = vst [vmem:[%s2743_s26 + $0x134] sm:$0xff] %v307_v40   ;;  %312 = vst [vmem:[%s2743_s26 + $0x13c] sm:$0xff] %v311_v41   ;;  %v319_v43 = vld [vmem:[%s2738_s25 + $0x278] sm:$0xff]   ;;  %v323_v44 = vld [vmem:[%s2738_s25 + $0x280] sm:$0xff]  }
  0x28   : > { %316 = vst [vmem:[%s2743_s26 + $0x144] sm:$0xff] %v315_v42   ;;  %320 = vst [vmem:[%s2743_s26 + $0x14c] sm:$0xff] %v319_v43   ;;  %v327_v45 = vld [vmem:[%s2738_s25 + $0x288] sm:$0xff]   ;;  %v331_v46 = vld [vmem:[%s2738_s25 + $0x290] sm:$0xff]  }
  0x29   : > { %324 = vst [vmem:[%s2743_s26 + $0x154] sm:$0xff] %v323_v44   ;;  %v335_v47 = vld [vmem:[%s2738_s25 + $0x298] sm:$0xff]   ;;  %328 = vst [vmem:[%s2743_s26 + $0x15c] sm:$0xff] %v327_v45   ;;  %v339_v48 = vld [vmem:[%s2738_s25 + $0x2a0] sm:$0xff]  }
  0x2a   : > { %332 = vst [vmem:[%s2743_s26 + $0x164] sm:$0xff] %v331_v46   ;;  %336 = vst [vmem:[%s2743_s26 + $0x16c] sm:$0xff] %v335_v47   ;;  %v343_v49 = vld [vmem:[%s2738_s25 + $0x2a8] sm:$0xff]   ;;  %v347_v50 = vld [vmem:[%s2738_s25 + $0x2b0] sm:$0xff]  }
  0x2b   : > { %340 = vst [vmem:[%s2743_s26 + $0x174] sm:$0xff] %v339_v48   ;;  %344 = vst [vmem:[%s2743_s26 + $0x17c] sm:$0xff] %v343_v49   ;;  %v351_v51 = vld [vmem:[%s2738_s25 + $0x2b8] sm:$0xf] }
  0x2c   : > { %348 = vst [vmem:[%s2743_s26 + $0x184] sm:$0xff] %v347_v50   ;;  %352 = vst [vmem:[%s2743_s26 + $0x18c] sm:$0xf] %v351_v51 }
  0x2d PF: > { %p1952_p5 = scmp.ge.s32.totalorder %s2680_s14, 1  ;;  %p574_p6 = scmp.lt.s32.totalorder %s2680_s14, 3 }
  0x2f   : > { %p575_p7 = pnand %p1952_p5, %p574_p6 }
  0x31   : > { %578 = sbr.rel (%p575_p7) target bundleno = 512 (0x200), region = 69 }
  0x38   : > { %v2598_v52 = vld [vmem:[%s3349_s1] sm:$0xff]   ;;  %v2682_v53 = vmov 0.0   ;;  %v2599_v54 = vld [vmem:[%s3349_s1 + $0x8] sm:$0xff]   ;;  %s581_s4 = sand.u32 1, %s2672_s12   ;;  %vm2683_vm0 = vmmov 0   ;;  %v2600_v55 = vld [vmem:[%s3349_s1 + $0x10] sm:$0xff]  }
  0x39   : > { %2298 = vmatprep.subr.bf16.mxu0 %v2682_v53  ;;  %2366 = vmatprep.subr.bf16.mxu1 %v2682_v53  ;;  %s2571_s5 = smul.u32 400, %s581_s4  ;;  %v2601_v56 = vld [vmem:[%s3349_s1 + $0x18] sm:$0xff]   ;;  %v2602_v57 = vld [vmem:[%s3349_s1 + $0x20] sm:$0xff]   ;;  %v2603_v58 = vld [vmem:[%s3349_s1 + $0x28] sm:$0xff]  }
  0x3a   : > { %2299 = vmatpush3.bf16.msra.mxu0 %v2598_v52  ;;  %2367 = vmatpush3.bf16.msra.mxu1 %v2598_v52  ;;  %v2604_v59 = vld [vmem:[%s3349_s1 + $0x30] sm:$0xff]   ;;  %v2605_v60 = vld [vmem:[%s3349_s1 + $0x38] sm:$0xff]   ;;  %s605_s24 = smul.u32 25, %s1947_s15 }
  0x3b   : > { %2300 = vmatprep.subr.bf16.mxu0 %v2682_v53  ;;  %2368 = vmatprep.subr.bf16.mxu1 %v2682_v53  ;;  %s2868_s8 = scalar_lea.vmem [#allocation2], %s2571_s5 }
  0x3c   : > { %2314 = vmatprep.mubr.msk.bf16.mxu0 %vm2683_vm0, %v2682_v53  ;;  %2382 = vmatprep.mubr.msk.bf16.mxu1 %vm2683_vm0, %v2682_v53  ;;  %v2606_v61 = vld [vmem:[%s2868_s8] sm:$0xff]   ;;  %v2608_v63 = vld [vmem:[%s2868_s8 + $0x8] sm:$0xff]   ;;  %v2610_v1 = vld [vmem:[%s2868_s8 + $0x10] sm:$0xff]   ;;  %p606_p8 = scmp.lt.s32.totalorder %s605_s24, 49 }
  0x3d   : > { %v2607_v62 = vld [vmem:[%s2868_s8 + $0x64] sm:$0xff]   ;;  %v2609_v0 = vld [vmem:[%s2868_s8 + $0x6c] sm:$0xff]   ;;  %v2611_v2 = vld [vmem:[%s2868_s8 + $0x74] sm:$0xff]  }
  0x3e   : > { %2301 = vmatpush3.bf16.msra.mxu0 %v2599_v54  ;;  %2369 = vmatpush3.bf16.msra.mxu1 %v2599_v54  ;;  %v2612_v3 = vld [vmem:[%s2868_s8 + $0x18] sm:$0xff]   ;;  %v2614_v5 = vld [vmem:[%s2868_s8 + $0x20] sm:$0xff]   ;;  %v2616_v7 = vld [vmem:[%s2868_s8 + $0x28] sm:$0xff]   ;;  %s3392_s24 = smov (!%p606_p8, %s605_s24), 49 }
  0x3f   : > { %2302 = vmatprep.subr.bf16.mxu0 %v2682_v53  ;;  %2370 = vmatprep.subr.bf16.mxu1 %v2682_v53  ;;  %v2613_v4 = vld [vmem:[%s2868_s8 + $0x7c] sm:$0xff]   ;;  %v2615_v6 = vld [vmem:[%s2868_s8 + $0x84] sm:$0xff]   ;;  %v2617_v8 = vld [vmem:[%s2868_s8 + $0x8c] sm:$0xff]   ;;  %s1953_s14 = sshll.u32 %s3392_s24, 2 }
  0x40   : > { %v2618_v9 = vld [vmem:[%s2868_s8 + $0x30] sm:$0xff]   ;;  %v2620_v11 = vld [vmem:[%s2868_s8 + $0x38] sm:$0xff]   ;;  %v2622_v13 = vld [vmem:[%s2868_s8 + $0x40] sm:$0xff]   ;;  %s3231_s28 = scalar_lea.vmem %s3351_s3, %s1953_s14 }
  0x41   : > { %v2619_v10 = vld [vmem:[%s2868_s8 + $0x94] sm:$0xff]   ;;  %v2621_v12 = vld [vmem:[%s2868_s8 + $0x9c] sm:$0xff]   ;;  %v2623_v14 = vld [vmem:[%s2868_s8 + $0xa4] sm:$0xff]  }
  0x42   : > { %2303 = vmatpush3.bf16.msra.mxu0 %v2600_v55  ;;  %2371 = vmatpush3.bf16.msra.mxu1 %v2600_v55  ;;  %v2624_v15 = vld [vmem:[%s2868_s8 + $0x48] sm:$0xff]   ;;  %v2626_v17 = vld [vmem:[%s2868_s8 + $0x50] sm:$0xff]   ;;  %v2628_v19 = vld [vmem:[%s2868_s8 + $0x58] sm:$0xff]  }
  0x43   : > { %2304 = vmatprep.subr.bf16.mxu0 %v2682_v53  ;;  %2372 = vmatprep.subr.bf16.mxu1 %v2682_v53  ;;  %v2625_v16 = vld [vmem:[%s2868_s8 + $0xac] sm:$0xff]   ;;  %v2627_v18 = vld [vmem:[%s2868_s8 + $0xb4] sm:$0xff]   ;;  %v2629_v20 = vld [vmem:[%s2868_s8 + $0xbc] sm:$0xff]  }
  0x44   : > { %v2630_v21 = vld [vmem:[%s2868_s8 + $0x60] ss:$0 sps:$4 sm:$0xff]   ;;  %v2631_v22 = vld [vmem:[%s2868_s8 + $0xc4] ss:$0 sps:$4 sm:$0xff]   ;;  %v2632_v23 = vld [vmem:[%s2868_s8 + $0xc8] sm:$0xff]  }
  0x45   : > { %v2633_v24 = vld [vmem:[%s2868_s8 + $0x12c] sm:$0xff]   ;;  %v2635_v26 = vld [vmem:[%s2868_s8 + $0x134] sm:$0xff]   ;;  %v2637_v28 = vld [vmem:[%s2868_s8 + $0x13c] sm:$0xff]  }
  0x46   : > { %2305 = vmatpush3.bf16.msra.mxu0 %v2601_v56  ;;  %2373 = vmatpush3.bf16.msra.mxu1 %v2601_v56  ;;  %v2634_v25 = vld [vmem:[%s2868_s8 + $0xd0] sm:$0xff]   ;;  %v2636_v27 = vld [vmem:[%s2868_s8 + $0xd8] sm:$0xff]   ;;  %v2638_v29 = vld [vmem:[%s2868_s8 + $0xe0] sm:$0xff]  }
  0x47   : > { %2306 = vmatprep.subr.bf16.mxu0 %v2682_v53  ;;  %2374 = vmatprep.subr.bf16.mxu1 %v2682_v53  ;;  %v2639_v30 = vld [vmem:[%s2868_s8 + $0x144] sm:$0xff]   ;;  %v2641_v32 = vld [vmem:[%s2868_s8 + $0x14c] sm:$0xff]   ;;  %v2643_v34 = vld [vmem:[%s2868_s8 + $0x154] sm:$0xff]  }
  0x48   : > { %v2640_v31 = vld [vmem:[%s2868_s8 + $0xe8] sm:$0xff]   ;;  %v2642_v33 = vld [vmem:[%s2868_s8 + $0xf0] sm:$0xff]   ;;  %v2644_v35 = vld [vmem:[%s2868_s8 + $0xf8] sm:$0xff]  }
  0x49   : > { %v2645_v36 = vld [vmem:[%s2868_s8 + $0x15c] sm:$0xff]   ;;  %v2647_v38 = vld [vmem:[%s2868_s8 + $0x164] sm:$0xff]   ;;  %v2649_v40 = vld [vmem:[%s2868_s8 + $0x16c] sm:$0xff]  }
  0x4a   : > { %2307 = vmatpush3.bf16.msra.mxu0 %v2602_v57  ;;  %2375 = vmatpush3.bf16.msra.mxu1 %v2602_v57  ;;  %v2646_v37 = vld [vmem:[%s2868_s8 + $0x100] sm:$0xff]   ;;  %v2648_v39 = vld [vmem:[%s2868_s8 + $0x108] sm:$0xff]   ;;  %v2650_v41 = vld [vmem:[%s2868_s8 + $0x110] sm:$0xff]  }
  0x4b   : > { %2308 = vmatprep.subr.bf16.mxu0 %v2682_v53  ;;  %2376 = vmatprep.subr.bf16.mxu1 %v2682_v53  ;;  %v2651_v42 = vld [vmem:[%s2868_s8 + $0x174] sm:$0xff]   ;;  %v2653_v44 = vld [vmem:[%s2868_s8 + $0x17c] sm:$0xff]   ;;  %v2655_v46 = vld [vmem:[%s2868_s8 + $0x184] sm:$0xff]  }
  0x4c   : > { %v2652_v43 = vld [vmem:[%s2868_s8 + $0x118] sm:$0xff]   ;;  %v2654_v45 = vld [vmem:[%s2868_s8 + $0x120] sm:$0xff]   ;;  %v2656_v47 = vld [vmem:[%s2868_s8 + $0x128] ss:$0 sps:$4 sm:$0xff]  }
  0x4d   : > { %v2657_v48 = vld [vmem:[%s2868_s8 + $0x18c] ss:$0 sps:$4 sm:$0xff]  }
  0x4e   : > { %2309 = vmatpush3.bf16.msra.mxu0 %v2603_v58  ;;  %2377 = vmatpush3.bf16.msra.mxu1 %v2603_v58 }
  0x4f   : > { %2310 = vmatprep.subr.bf16.mxu0 %v2682_v53  ;;  %2378 = vmatprep.subr.bf16.mxu1 %v2682_v53 }
  0x52   : > { %2311 = vmatpush3.bf16.msra.mxu0 %v2604_v59  ;;  %2379 = vmatpush3.bf16.msra.mxu1 %v2604_v59 }
  0x53   : > { %2312 = vmatprep.subr.bf16.mxu0 %v2682_v53  ;;  %2380 = vmatprep.subr.bf16.mxu1 %v2682_v53 }
  0x56   : > { %2313 = vmatpush3.bf16.msra.mxu0 %v2605_v60  ;;  %2381 = vmatpush3.bf16.msra.mxu1 %v2605_v60 }
  0x57   : > { %2434 = vmatprep.subr.bf16.mxu0 %v2682_v53  ;;  %2502 = vmatprep.subr.bf16.mxu1 %v2682_v53 }
  0x59   : > { %2315 = vmatmul.mubr.bf16.vlgmr.msra.gmra.mrb[0].mxu0 %v2606_v61  ;;  %2383 = vmatmul.mubr.bf16.vlgmr.msra.gmra.mrb[0].mxu1 %v2607_v62 }
  0x5a   : > { %2435 = vmatpush3.bf16.msra.mxu0 %v2598_v52  ;;  %2503 = vmatpush3.bf16.msra.mxu1 %v2598_v52 }
  0x5b   : > { %2318 = vmatprep.mubr.msk.bf16.mxu0 %vm2683_vm0, %v2682_v53  ;;  %2386 = vmatprep.mubr.msk.bf16.mxu1 %vm2683_vm0, %v2682_v53 }
  0x5c   : > { %2436 = vmatprep.subr.bf16.mxu0 %v2682_v53  ;;  %2504 = vmatprep.subr.bf16.mxu1 %v2682_v53 }
  0x5e   : > { %2437 = vmatpush3.bf16.msra.mxu0 %v2599_v54  ;;  %2505 = vmatpush3.bf16.msra.mxu1 %v2599_v54 }
  0x5f   : > { %2438 = vmatprep.subr.bf16.mxu0 %v2682_v53  ;;  %2506 = vmatprep.subr.bf16.mxu1 %v2682_v53 }
  0x61   : > { %2319 = vmatmul.mubr.bf16.gmra.mrb[4].mxu0 %v2608_v63  ;;  %2387 = vmatmul.mubr.bf16.gmra.mrb[4].mxu1 %v2609_v0 }
  0x62   : > { %2322 = vmatprep.mubr.msk.bf16.mxu0 %vm2683_vm0, %v2682_v53  ;;  %2390 = vmatprep.mubr.msk.bf16.mxu1 %vm2683_vm0, %v2682_v53 }
  0x63   : > { %2439 = vmatpush3.bf16.msra.mxu0 %v2600_v55  ;;  %2507 = vmatpush3.bf16.msra.mxu1 %v2600_v55 }
  0x64   : > { %2440 = vmatprep.subr.bf16.mxu0 %v2682_v53  ;;  %2508 = vmatprep.subr.bf16.mxu1 %v2682_v53 }
  0x67   : > { %2441 = vmatpush3.bf16.msra.mxu0 %v2601_v56  ;;  %2509 = vmatpush3.bf16.msra.mxu1 %v2601_v56 }
  0x68   : > { %2442 = vmatprep.subr.bf16.mxu0 %v2682_v53  ;;  %2510 = vmatprep.subr.bf16.mxu1 %v2682_v53 }
  0x69   : > { %2323 = vmatmul.mubr.bf16.gmra.mrb[8].mxu0 %v2610_v1  ;;  %2391 = vmatmul.mubr.bf16.gmra.mrb[8].mxu1 %v2611_v2 }
  0x6a   : > { %2326 = vmatprep.mubr.msk.bf16.mxu0 %vm2683_vm0, %v2682_v53  ;;  %2394 = vmatprep.mubr.msk.bf16.mxu1 %vm2683_vm0, %v2682_v53 }
  0x6b   : > { %2443 = vmatpush3.bf16.msra.mxu0 %v2602_v57  ;;  %2511 = vmatpush3.bf16.msra.mxu1 %v2602_v57 }
  0x6c   : > { %2444 = vmatprep.subr.bf16.mxu0 %v2682_v53  ;;  %2512 = vmatprep.subr.bf16.mxu1 %v2682_v53 }
  0x6f   : > { %2445 = vmatpush3.bf16.msra.mxu0 %v2603_v58  ;;  %2513 = vmatpush3.bf16.msra.mxu1 %v2603_v58 }
  0x70   : > { %2446 = vmatprep.subr.bf16.mxu0 %v2682_v53  ;;  %2514 = vmatprep.subr.bf16.mxu1 %v2682_v53 }
  0x71   : > { %2327 = vmatmul.mubr.bf16.gmra.mrb[12].mxu0 %v2612_v3  ;;  %2395 = vmatmul.mubr.bf16.gmra.mrb[12].mxu1 %v2613_v4 }
  0x72   : > { %2330 = vmatprep.mubr.msk.bf16.mxu0 %vm2683_vm0, %v2682_v53  ;;  %2398 = vmatprep.mubr.msk.bf16.mxu1 %vm2683_vm0, %v2682_v53 }
  0x73   : > { %2447 = vmatpush3.bf16.msra.mxu0 %v2604_v59  ;;  %2515 = vmatpush3.bf16.msra.mxu1 %v2604_v59 }
  0x74   : > { %2448 = vmatprep.subr.bf16.mxu0 %v2682_v53  ;;  %2516 = vmatprep.subr.bf16.mxu1 %v2682_v53 }
  0x77   : > { %2449 = vmatpush3.bf16.msra.mxu0 %v2605_v60  ;;  %2517 = vmatpush3.bf16.msra.mxu1 %v2605_v60 }
  0x79   : > { %2331 = vmatmul.mubr.bf16.gmra.mrb[16].mxu0 %v2614_v5  ;;  %2399 = vmatmul.mubr.bf16.gmra.mrb[16].mxu1 %v2615_v6 }
  0x7a   : > { %2334 = vmatprep.mubr.msk.bf16.mxu0 %vm2683_vm0, %v2682_v53  ;;  %2402 = vmatprep.mubr.msk.bf16.mxu1 %vm2683_vm0, %v2682_v53 }
  0x81   : > { %2335 = vmatmul.mubr.bf16.gmra.mrb[20].mxu0 %v2616_v7  ;;  %2403 = vmatmul.mubr.bf16.gmra.mrb[20].mxu1 %v2617_v8 }
  0x82   : > { %2338 = vmatprep.mubr.msk.bf16.mxu0 %vm2683_vm0, %v2682_v53  ;;  %2406 = vmatprep.mubr.msk.bf16.mxu1 %vm2683_vm0, %v2682_v53 }
  0x89   : > { %2339 = vmatmul.mubr.bf16.gmra.mrb[24].mxu0 %v2618_v9  ;;  %2407 = vmatmul.mubr.bf16.gmra.mrb[24].mxu1 %v2619_v10 }
  0x8a   : > { %2342 = vmatprep.mubr.msk.bf16.mxu0 %vm2683_vm0, %v2682_v53  ;;  %2410 = vmatprep.mubr.msk.bf16.mxu1 %vm2683_vm0, %v2682_v53 }
  0x91   : > { %2343 = vmatmul.mubr.bf16.gmra.mrb[28].mxu0 %v2620_v11  ;;  %2411 = vmatmul.mubr.bf16.gmra.mrb[28].mxu1 %v2621_v12 }
  0x92   : > { %2346 = vmatprep.mubr.msk.bf16.mxu0 %vm2683_vm0, %v2682_v53  ;;  %2414 = vmatprep.mubr.msk.bf16.mxu1 %vm2683_vm0, %v2682_v53 }
  0x99   : > { %2347 = vmatmul.mubr.bf16.gmra.mrb[32].mxu0 %v2622_v13  ;;  %2415 = vmatmul.mubr.bf16.gmra.mrb[32].mxu1 %v2623_v14 }
  0x9a   : > { %2350 = vmatprep.mubr.msk.bf16.mxu0 %vm2683_vm0, %v2682_v53  ;;  %2418 = vmatprep.mubr.msk.bf16.mxu1 %vm2683_vm0, %v2682_v53 }
  0xa1   : > { %2351 = vmatmul.mubr.bf16.gmra.mrb[36].mxu0 %v2624_v15  ;;  %2419 = vmatmul.mubr.bf16.gmra.mrb[36].mxu1 %v2625_v16 }
  0xa2   : > { %2354 = vmatprep.mubr.msk.bf16.mxu0 %vm2683_vm0, %v2682_v53  ;;  %2422 = vmatprep.mubr.msk.bf16.mxu1 %vm2683_vm0, %v2682_v53 }
  0xa9   : > { %2355 = vmatmul.mubr.bf16.gmra.mrb[40].mxu0 %v2626_v17  ;;  %2423 = vmatmul.mubr.bf16.gmra.mrb[40].mxu1 %v2627_v18 }
  0xaa   : > { %2358 = vmatprep.mubr.msk.bf16.mxu0 %vm2683_vm0, %v2682_v53  ;;  %2426 = vmatprep.mubr.msk.bf16.mxu1 %vm2683_vm0, %v2682_v53 }
  0xb1   : > { %2359 = vmatmul.mubr.bf16.gmra.mrb[44].mxu0 %v2628_v19  ;;  %2427 = vmatmul.mubr.bf16.gmra.mrb[44].mxu1 %v2629_v20 }
  0xb2   : > { %2362 = vmatprep.mubr.msk.bf16.mxu0 %vm2683_vm0, %v2682_v53  ;;  %2430 = vmatprep.mubr.msk.bf16.mxu1 %vm2683_vm0, %v2682_v53 }
  0xb9   : > { %2363 = vmatmul.mubr.bf16.gmra.mrb[48].mxu0 %v2630_v21  ;;  %2431 = vmatmul.mubr.bf16.gmra.mrb[48].mxu1 %v2631_v22 }
  0xba   : > { %2450 = vmatprep.mubr.msk.bf16.mxu0 %vm2683_vm0, %v2682_v53  ;;  %2518 = vmatprep.mubr.msk.bf16.mxu1 %vm2683_vm0, %v2682_v53 }
  0xc1   : > { %2451 = vmatmul.mubr.bf16.vlgmr.msra.gmra.mrb[52].mxu0 %v2632_v23  ;;  %2519 = vmatmul.mubr.bf16.vlgmr.msra.gmra.mrb[52].mxu1 %v2633_v24 }
  0xc2   : > { %2454 = vmatprep.mubr.msk.bf16.mxu0 %vm2683_vm0, %v2682_v53  ;;  %2522 = vmatprep.mubr.msk.bf16.mxu1 %vm2683_vm0, %v2682_v53 }
  0xc9   : > { %2455 = vmatmul.mubr.bf16.gmra.mrb[56].mxu0 %v2634_v25  ;;  %2523 = vmatmul.mubr.bf16.gmra.mrb[56].mxu1 %v2635_v26 }
  0xca   : > { %2458 = vmatprep.mubr.msk.bf16.mxu0 %vm2683_vm0, %v2682_v53  ;;  %2526 = vmatprep.mubr.msk.bf16.mxu1 %vm2683_vm0, %v2682_v53 }
  0xd1   : > { %2459 = vmatmul.mubr.bf16.gmra.mrb[60].mxu0 %v2636_v27  ;;  %2527 = vmatmul.mubr.bf16.gmra.mrb[60].mxu1 %v2637_v28 }
  0xd2   : > { %2462 = vmatprep.mubr.msk.bf16.mxu0 %vm2683_vm0, %v2682_v53  ;;  %2530 = vmatprep.mubr.msk.bf16.mxu1 %vm2683_vm0, %v2682_v53 }
  0xd9   : > { %2463 = vmatmul.mubr.bf16.gmra.mrb[64].mxu0 %v2638_v29  ;;  %2531 = vmatmul.mubr.bf16.gmra.mrb[64].mxu1 %v2639_v30 }
  0xda   : > { %2466 = vmatprep.mubr.msk.bf16.mxu0 %vm2683_vm0, %v2682_v53  ;;  %2534 = vmatprep.mubr.msk.bf16.mxu1 %vm2683_vm0, %v2682_v53 }
  0xe1   : > { %2467 = vmatmul.mubr.bf16.gmra.mrb[68].mxu0 %v2640_v31  ;;  %2535 = vmatmul.mubr.bf16.gmra.mrb[68].mxu1 %v2641_v32 }
  0xe2   : > { %2470 = vmatprep.mubr.msk.bf16.mxu0 %vm2683_vm0, %v2682_v53  ;;  %2538 = vmatprep.mubr.msk.bf16.mxu1 %vm2683_vm0, %v2682_v53 }
  0xe9   : > { %2471 = vmatmul.mubr.bf16.gmra.mrb[72].mxu0 %v2642_v33  ;;  %2539 = vmatmul.mubr.bf16.gmra.mrb[72].mxu1 %v2643_v34 }
  0xea   : > { %2474 = vmatprep.mubr.msk.bf16.mxu0 %vm2683_vm0, %v2682_v53  ;;  %2542 = vmatprep.mubr.msk.bf16.mxu1 %vm2683_vm0, %v2682_v53 }
  0xf1   : > { %2475 = vmatmul.mubr.bf16.gmra.mrb[76].mxu0 %v2644_v35  ;;  %2543 = vmatmul.mubr.bf16.gmra.mrb[76].mxu1 %v2645_v36 }
  0xf2   : > { %2478 = vmatprep.mubr.msk.bf16.mxu0 %vm2683_vm0, %v2682_v53  ;;  %2546 = vmatprep.mubr.msk.bf16.mxu1 %vm2683_vm0, %v2682_v53 }
  0xf9   : > { %2479 = vmatmul.mubr.bf16.gmra.mrb[80].mxu0 %v2646_v37  ;;  %2547 = vmatmul.mubr.bf16.gmra.mrb[80].mxu1 %v2647_v38 }
  0xfa   : > { %2482 = vmatprep.mubr.msk.bf16.mxu0 %vm2683_vm0, %v2682_v53  ;;  %2550 = vmatprep.mubr.msk.bf16.mxu1 %vm2683_vm0, %v2682_v53 }
 0x101   : > { %2483 = vmatmul.mubr.bf16.gmra.mrb[84].mxu0 %v2648_v39  ;;  %2551 = vmatmul.mubr.bf16.gmra.mrb[84].mxu1 %v2649_v40 }
 0x102   : > { %2486 = vmatprep.mubr.msk.bf16.mxu0 %vm2683_vm0, %v2682_v53  ;;  %2554 = vmatprep.mubr.msk.bf16.mxu1 %vm2683_vm0, %v2682_v53 }
 0x109   : > { %2487 = vmatmul.mubr.bf16.gmra.mrb[88].mxu0 %v2650_v41  ;;  %2555 = vmatmul.mubr.bf16.gmra.mrb[88].mxu1 %v2651_v42 }
 0x10a   : > { %2490 = vmatprep.mubr.msk.bf16.mxu0 %vm2683_vm0, %v2682_v53  ;;  %2558 = vmatprep.mubr.msk.bf16.mxu1 %vm2683_vm0, %v2682_v53 }
 0x111   : > { %2491 = vmatmul.mubr.bf16.gmra.mrb[92].mxu0 %v2652_v43  ;;  %2559 = vmatmul.mubr.bf16.gmra.mrb[92].mxu1 %v2653_v44 }
 0x112   : > { %2494 = vmatprep.mubr.msk.bf16.mxu0 %vm2683_vm0, %v2682_v53  ;;  %2562 = vmatprep.mubr.msk.bf16.mxu1 %vm2683_vm0, %v2682_v53 }
 0x119   : > { %2495 = vmatmul.mubr.bf16.gmra.mrb[96].mxu0 %v2654_v45  ;;  %2563 = vmatmul.mubr.bf16.gmra.mrb[96].mxu1 %v2655_v46 }
 0x11a   : > { %2498 = vmatprep.mubr.msk.bf16.mxu0 %vm2683_vm0, %v2682_v53  ;;  %2566 = vmatprep.mubr.msk.bf16.mxu1 %vm2683_vm0, %v2682_v53  ;;  %v3218_v53 = vld [vmem:[%s3350_s2] ss:$0 sm:$0xff] }
 0x121   : > { %2499 = vmatmul.mubr.bf16.gmra.mrb[100].mxu0 %v2656_v47  ;;  %2567 = vmatmul.mubr.bf16.gmra.mrb[100].mxu1 %v2657_v48 }
 0x12c   : > { %v3063_v49 = vpop.f32.mrb[0].mxu0  ;;  %v3065_v50 = vpop.f32.mrb[0].mxu1 }
 0x12d   : > { %v1627_v51 = vmax.f32 %v3063_v49, %v3065_v50  ;;  %v2316_v52 = vpop.f32.mrb[1].mxu0  ;;  %v2384_v54 = vpop.f32.mrb[1].mxu1 }
 0x12e   : > { %v3069_v55 = vpop.f32.mrb[2].mxu0  ;;  %v3071_v56 = vpop.f32.mrb[2].mxu1 }
 0x12f   : > { %v2317_v57 = vpop.f32.mrb[3].mxu0  ;;  %v2385_v58 = vpop.f32.mrb[3].mxu1 }
 0x134   : > { %v3075_v59 = vpop.f32.mrb[4].mxu0  ;;  %v3077_v60 = vpop.f32.mrb[4].mxu1 }
 0x135   : > { %v2320_v62 = vpop.f32.mrb[5].mxu0  ;;  %v2388_v63 = vpop.f32.mrb[5].mxu1 }
 0x136   : > { %v3081_v0 = vpop.f32.mrb[6].mxu0  ;;  %v3083_v1 = vpop.f32.mrb[6].mxu1 }
 0x137   : > { %v2321_v3 = vpop.f32.mrb[7].mxu0  ;;  %v2389_v4 = vpop.f32.mrb[7].mxu1 }
 0x13c   : > { %v3087_v5 = vpop.f32.mrb[8].mxu0  ;;  %v3089_v6 = vpop.f32.mrb[8].mxu1 }
 0x13d   : > { %v2324_v8 = vpop.f32.mrb[9].mxu0  ;;  %v2392_v9 = vpop.f32.mrb[9].mxu1 }
 0x13e   : > { %v3093_v10 = vpop.f32.mrb[10].mxu0  ;;  %v3095_v11 = vpop.f32.mrb[10].mxu1 }
 0x13f   : > { %v2325_v13 = vpop.f32.mrb[11].mxu0  ;;  %v2393_v14 = vpop.f32.mrb[11].mxu1 }
 0x144   : > { %v3099_v15 = vpop.f32.mrb[12].mxu0  ;;  %v3101_v16 = vpop.f32.mrb[12].mxu1 }
 0x145   : > { %v2328_v18 = vpop.f32.mrb[13].mxu0  ;;  %v2396_v19 = vpop.f32.mrb[13].mxu1 }
 0x146   : > { %v3105_v20 = vpop.f32.mrb[14].mxu0  ;;  %v3107_v21 = vpop.f32.mrb[14].mxu1 }
 0x147   : > { %v2329_v23 = vpop.f32.mrb[15].mxu0  ;;  %v2397_v24 = vpop.f32.mrb[15].mxu1 }
 0x14c   : > { %v3111_v25 = vpop.f32.mrb[16].mxu0  ;;  %v3113_v26 = vpop.f32.mrb[16].mxu1 }
 0x14d   : > { %v2332_v28 = vpop.f32.mrb[17].mxu0  ;;  %v2400_v29 = vpop.f32.mrb[17].mxu1 }
 0x14e   : > { %v3117_v30 = vpop.f32.mrb[18].mxu0  ;;  %v3119_v31 = vpop.f32.mrb[18].mxu1 }
 0x14f   : > { %v2333_v33 = vpop.f32.mrb[19].mxu0  ;;  %v2401_v34 = vpop.f32.mrb[19].mxu1 }
 0x154   : > { %v3123_v35 = vpop.f32.mrb[20].mxu0  ;;  %v3125_v36 = vpop.f32.mrb[20].mxu1 }
 0x155   : > { %v2336_v38 = vpop.f32.mrb[21].mxu0  ;;  %v2404_v39 = vpop.f32.mrb[21].mxu1 }
 0x156   : > { %v3129_v40 = vpop.f32.mrb[22].mxu0  ;;  %v3131_v41 = vpop.f32.mrb[22].mxu1 }
 0x157   : > { %v2337_v43 = vpop.f32.mrb[23].mxu0  ;;  %v2405_v44 = vpop.f32.mrb[23].mxu1 }
 0x15c   : > { %v3135_v45 = vpop.f32.mrb[24].mxu0  ;;  %v3137_v46 = vpop.f32.mrb[24].mxu1 }
 0x15d   : > { %v2340_v48 = vpop.f32.mrb[25].mxu0  ;;  %v2408_v52 = vpop.f32.mrb[25].mxu1 }
 0x15e   : > { %v3141_v54 = vpop.f32.mrb[26].mxu0  ;;  %v3143_v57 = vpop.f32.mrb[26].mxu1 }
 0x15f   : > { %v2341_v62 = vpop.f32.mrb[27].mxu0  ;;  %v2409_v63 = vpop.f32.mrb[27].mxu1 }
 0x164   : > { %v3147_v3 = vpop.f32.mrb[28].mxu0  ;;  %v3149_v4 = vpop.f32.mrb[28].mxu1 }
 0x165   : > { %v2344_v9 = vpop.f32.mrb[29].mxu0  ;;  %v2412_v13 = vpop.f32.mrb[29].mxu1 }
 0x166   : > { %v3153_v14 = vpop.f32.mrb[30].mxu0  ;;  %v3155_v18 = vpop.f32.mrb[30].mxu1 }
 0x167   : > { %v2345_v23 = vpop.f32.mrb[31].mxu0  ;;  %v2413_v24 = vpop.f32.mrb[31].mxu1 }
 0x16c   : > { %v3159_v28 = vpop.f32.mrb[32].mxu0  ;;  %v3161_v29 = vpop.f32.mrb[32].mxu1 }
 0x16d   : > { %v2348_v34 = vpop.f32.mrb[33].mxu0  ;;  %v2416_v38 = vpop.f32.mrb[33].mxu1 }
 0x16e   : > { %v3165_v39 = vpop.f32.mrb[34].mxu0  ;;  %v3167_v43 = vpop.f32.mrb[34].mxu1 }
 0x16f   : > { %v2349_v48 = vpop.f32.mrb[35].mxu0  ;;  %v2417_v52 = vpop.f32.mrb[35].mxu1 }
 0x174   : > { %v3171_v62 = vpop.f32.mrb[36].mxu0  ;;  %v3173_v63 = vpop.f32.mrb[36].mxu1 }
 0x175   : > { %v2352_v13 = vpop.f32.mrb[37].mxu0  ;;  %v2420_v23 = vpop.f32.mrb[37].mxu1 }
 0x176   : > { %v3177_v24 = vpop.f32.mrb[38].mxu0  ;;  %v3179_v34 = vpop.f32.mrb[38].mxu1 }
 0x177   : > { %v2353_v33 = vpop.f32.mrb[39].mxu0  ;;  %v2421_v44 = vpop.f32.mrb[39].mxu1 }
 0x17c   : > { %v3183_v48 = vpop.f32.mrb[40].mxu0  ;;  %v3185_v52 = vpop.f32.mrb[40].mxu1 }
 0x17d   : > { %v2356_v8 = vpop.f32.mrb[41].mxu0  ;;  %v2424_v9 = vpop.f32.mrb[41].mxu1 }
 0x17e   : > { %v3189_v13 = vpop.f32.mrb[42].mxu0  ;;  %v3191_v23 = vpop.f32.mrb[42].mxu1 }
 0x17f   : > { %v2357_v47 = vpop.f32.mrb[43].mxu0  ;;  %v2425_v38 = vpop.f32.mrb[43].mxu1 }
 0x184   : > { %v3195_v33 = vpop.f32.mrb[44].mxu0  ;;  %v3197_v44 = vpop.f32.mrb[44].mxu1 }
 0x185   : > { %v2360_v37 = vpop.f32.mrb[45].mxu0  ;;  %v2428_v8 = vpop.f32.mrb[45].mxu1 }
 0x186   : > { %v3201_v9 = vpop.f32.mrb[46].mxu0  ;;  %v3203_v19 = vpop.f32.mrb[46].mxu1 }
 0x187   : > { %3356 = vst [vmem:[#allocation3_spill] sm:$0xff] %v3201_v9  ;;  %3357 = vst [vmem:[#allocation4_spill] sm:$0xff] %v3203_v19  ;;  %v2361_v58 = vpop.f32.mrb[47].mxu0  ;;  %v2429_v47 = vpop.f32.mrb[47].mxu1 }
 0x18c   : > { %v3207_v38 = vpop.f32.mrb[48].mxu0  ;;  %v3209_v27 = vpop.f32.mrb[48].mxu1 }
 0x18d   : > { %3358 = vst [vmem:[#allocation5_spill] sm:$0xff] %v3207_v38  ;;  %3359 = vst [vmem:[#allocation6_spill] sm:$0xff] %v3209_v27  ;;  %v2364_v42 = vpop.f32.mrb[49].mxu0  ;;  %v2432_v37 = vpop.f32.mrb[49].mxu1 }
 0x18e   : > { %v910_v17 = vpop.f32.mrb[50].mxu0  ;;  %v1148_v8 = vpop.f32.mrb[50].mxu1 }
 0x18f   : > { %v2365_v12 = vpop.f32.mrb[51].mxu0  ;;  %v2433_v7 = vpop.f32.mrb[51].mxu1 }
 0x194   : > { %v1287_v2 = vpop.f32.mrb[52].mxu0  ;;  %v1525_v32 = vpop.f32.mrb[52].mxu1 }
 0x195   : > { %v1652_v58 = vmax.f32 %v1287_v2, %v1525_v32  ;;  %v2452_v47 = vpop.f32.mrb[53].mxu0  ;;  %v2520_v61 = vpop.f32.mrb[53].mxu1 }
 0x196   : > { %v1290_v22 = vpop.f32.mrb[54].mxu0  ;;  %v1528_v42 = vpop.f32.mrb[54].mxu1  ;;  %v3360_v61 = vmax.f32 %v3069_v55, %v3071_v56  ;;  %v3361_v56 = vmax.f32 %v3075_v59, %v3077_v60 }
 0x197   : > { %v1677_v12 = vmax.f32 %v1627_v51, %v1652_v58  ;;  %v1653_v7 = vmax.f32 %v1290_v22, %v1528_v42  ;;  %v2453_v17 = vpop.f32.mrb[55].mxu0  ;;  %v2521_v37 = vpop.f32.mrb[55].mxu1 }
 0x198   : > { %v3362_v17 = vmax.f32 %v3081_v0, %v3083_v1 }
 0x199   : > { %v1709_v8 = vadd.f32 %v3218_v53, %v1677_v12  ;;  %v1678_v2 = vmax.f32 %v3360_v61, %v1653_v7 }
 0x19b   : > { %v1710_v32 = vadd.f32 %v3218_v53, %v1678_v2  ;;  %v1734_v38 = vmax.f32 %v1709_v8, 0.0 }
 0x19c   : > { %v1295_v47 = vpop.f32.mrb[56].mxu0  ;;  %v1533_v27 = vpop.f32.mrb[56].mxu1 }
 0x19d   : > { %v1735_v19 = vmax.f32 %v1710_v32, 0.0  ;;  %v1654_v9 = vmax.f32 %v1295_v47, %v1533_v27  ;;  %v2456_v49 = vpop.f32.mrb[57].mxu0  ;;  %v2524_v50 = vpop.f32.mrb[57].mxu1 }
 0x19e   : > { %v1298_v51 = vpop.f32.mrb[58].mxu0  ;;  %v1536_v22 = vpop.f32.mrb[58].mxu1  ;;  %v3363_v50 = vmax.f32 %v3087_v5, %v3089_v6 }
 0x19f   : > { %v2146_v55 = vpack.c.bf16 %v1735_v19, %v1734_v38  ;;  %v1679_v58 = vmax.f32 %v3361_v56, %v1654_v9  ;;  %v1655_v42 = vmax.f32 %v1298_v51, %v1536_v22  ;;  %v2457_v12 = vpop.f32.mrb[59].mxu0  ;;  %v2525_v7 = vpop.f32.mrb[59].mxu1  ;;  %v3364_v56 = vmax.f32 %v3093_v10, %v3095_v11 }
 0x1a1   : > { %2147 = vst [vmem:[%s3231_s28] sm:$0xff] %v2146_v55   ;;  %v1711_v27 = vadd.f32 %v3218_v53, %v1679_v58  ;;  %v1680_v37 = vmax.f32 %v3362_v17, %v1655_v42 }
 0x1a3   : > { %v1712_v8 = vadd.f32 %v3218_v53, %v1680_v37  ;;  %v1736_v19 = vmax.f32 %v1711_v27, 0.0 }
 0x1a4   : > { %v1303_v61 = vpop.f32.mrb[60].mxu0  ;;  %v1541_v2 = vpop.f32.mrb[60].mxu1 }
 0x1a5   : > { %v1737_v38 = vmax.f32 %v1712_v8, 0.0  ;;  %v1656_v32 = vmax.f32 %v1303_v61, %v1541_v2  ;;  %v2460_v59 = vpop.f32.mrb[61].mxu0  ;;  %v2528_v60 = vpop.f32.mrb[61].mxu1 }
 0x1a6   : > { %v1306_v9 = vpop.f32.mrb[62].mxu0  ;;  %v1544_v47 = vpop.f32.mrb[62].mxu1  ;;  %v3366_v60 = vmax.f32 %v3105_v20, %v3107_v21 }
 0x1a7   : > { %v2151_v49 = vpack.c.bf16 %v1737_v38, %v1736_v19  ;;  %v1681_v51 = vmax.f32 %v3363_v50, %v1656_v32  ;;  %v1657_v22 = vmax.f32 %v1306_v9, %v1544_v47  ;;  %v2461_v0 = vpop.f32.mrb[63].mxu0  ;;  %v2529_v1 = vpop.f32.mrb[63].mxu1  ;;  %v3365_v19 = vmax.f32 %v3099_v15, %v3101_v16 }
 0x1a9   : > { %2203 = vst [vmem:[%s3231_s28 + $0x8] sm:$0xff] %v2151_v49   ;;  %v1713_v55 = vadd.f32 %v3218_v53, %v1681_v51  ;;  %v1682_v58 = vmax.f32 %v3364_v56, %v1657_v22 }
 0x1ab   : > { %v1714_v42 = vadd.f32 %v3218_v53, %v1682_v58  ;;  %v1738_v27 = vmax.f32 %v1713_v55, 0.0  ;;  %v3367_v58 = vmax.f32 %v3111_v25, %v3113_v26 }
 0x1ac   : > { %v1311_v12 = vpop.f32.mrb[64].mxu0  ;;  %v1549_v7 = vpop.f32.mrb[64].mxu1 }
 0x1ad   : > { %v1739_v17 = vmax.f32 %v1714_v42, 0.0  ;;  %v1658_v37 = vmax.f32 %v1311_v12, %v1549_v7  ;;  %v2464_v5 = vpop.f32.mrb[65].mxu0  ;;  %v2532_v6 = vpop.f32.mrb[65].mxu1 }
 0x1ae   : > { %v1314_v8 = vpop.f32.mrb[66].mxu0  ;;  %v1552_v61 = vpop.f32.mrb[66].mxu1 }
 0x1af   : > { %v2156_v2 = vpack.c.bf16 %v1739_v17, %v1738_v27  ;;  %v1683_v38 = vmax.f32 %v3365_v19, %v1658_v37  ;;  %v1659_v32 = vmax.f32 %v1314_v8, %v1552_v61  ;;  %v2465_v10 = vpop.f32.mrb[67].mxu0  ;;  %v2533_v11 = vpop.f32.mrb[67].mxu1  ;;  %v3368_v27 = vmax.f32 %v3117_v30, %v3119_v31 }
 0x1b0   : > { %v3369_v10 = vmax.f32 %v3123_v35, %v3125_v36 }
 0x1b1   : > { %2204 = vst [vmem:[%s3231_s28 + $0x10] sm:$0xff] %v2156_v2   ;;  %v1715_v59 = vadd.f32 %v3218_v53, %v1683_v38  ;;  %v1684_v9 = vmax.f32 %v3366_v60, %v1659_v32 }
 0x1b3   : > { %v1716_v47 = vadd.f32 %v3218_v53, %v1684_v9  ;;  %v1740_v51 = vmax.f32 %v1715_v59, 0.0  ;;  %v3370_v9 = vmax.f32 %v3129_v40, %v3131_v41 }
 0x1b4   : > { %v1319_v49 = vpop.f32.mrb[68].mxu0  ;;  %v1557_v50 = vpop.f32.mrb[68].mxu1 }
 0x1b5   : > { %v1741_v22 = vmax.f32 %v1716_v47, 0.0  ;;  %v1660_v0 = vmax.f32 %v1319_v49, %v1557_v50  ;;  %v2468_v15 = vpop.f32.mrb[69].mxu0  ;;  %v2536_v16 = vpop.f32.mrb[69].mxu1 }
 0x1b6   : > { %v1322_v1 = vpop.f32.mrb[70].mxu0  ;;  %v1560_v55 = vpop.f32.mrb[70].mxu1 }
 0x1b7   : > { %v2161_v56 = vpack.c.bf16 %v1741_v22, %v1740_v51  ;;  %v1685_v42 = vmax.f32 %v3367_v58, %v1660_v0  ;;  %v1661_v12 = vmax.f32 %v1322_v1, %v1560_v55  ;;  %v2469_v20 = vpop.f32.mrb[71].mxu0  ;;  %v2537_v21 = vpop.f32.mrb[71].mxu1 }
 0x1b8   : > { %v3372_v20 = vmax.f32 %v3141_v54, %v3143_v57 }
 0x1b9   : > { %2205 = vst [vmem:[%s3231_s28 + $0x18] sm:$0xff] %v2161_v56   ;;  %v1717_v7 = vadd.f32 %v3218_v53, %v1685_v42  ;;  %v1686_v17 = vmax.f32 %v3368_v27, %v1661_v12  ;;  %v3371_v56 = vmax.f32 %v3135_v45, %v3137_v46 }
 0x1bb   : > { %v1718_v37 = vadd.f32 %v3218_v53, %v1686_v17  ;;  %v1742_v8 = vmax.f32 %v1717_v7, 0.0 }
 0x1bc   : > { %v1327_v5 = vpop.f32.mrb[72].mxu0  ;;  %v1565_v6 = vpop.f32.mrb[72].mxu1 }
 0x1bd   : > { %v1743_v61 = vmax.f32 %v1718_v37, 0.0  ;;  %v1662_v2 = vmax.f32 %v1327_v5, %v1565_v6  ;;  %v2472_v25 = vpop.f32.mrb[73].mxu0  ;;  %v2540_v26 = vpop.f32.mrb[73].mxu1 }
 0x1be   : > { %v1330_v19 = vpop.f32.mrb[74].mxu0  ;;  %v1568_v38 = vpop.f32.mrb[74].mxu1  ;;  %v3373_v25 = vmax.f32 %v3147_v3, %v3149_v4 }
 0x1bf   : > { %v2166_v32 = vpack.c.bf16 %v1743_v61, %v1742_v8  ;;  %v1687_v11 = vmax.f32 %v3369_v10, %v1662_v2  ;;  %v1663_v59 = vmax.f32 %v1330_v19, %v1568_v38  ;;  %v2473_v30 = vpop.f32.mrb[75].mxu0  ;;  %v2541_v31 = vpop.f32.mrb[75].mxu1 }
 0x1c1   : > { %2206 = vst [vmem:[%s3231_s28 + $0x20] sm:$0xff] %v2166_v32   ;;  %v1719_v60 = vadd.f32 %v3218_v53, %v1687_v11  ;;  %v1688_v47 = vmax.f32 %v3370_v9, %v1663_v59  ;;  %v3374_v32 = vmax.f32 %v3153_v14, %v3155_v18 }
 0x1c3   : > { %v1720_v49 = vadd.f32 %v3218_v53, %v1688_v47  ;;  %v1744_v22 = vmax.f32 %v1719_v60, 0.0 }
 0x1c4   : > { %v1335_v50 = vpop.f32.mrb[76].mxu0  ;;  %v1573_v51 = vpop.f32.mrb[76].mxu1 }
 0x1c5   : > { %v1745_v0 = vmax.f32 %v1720_v49, 0.0  ;;  %v1664_v15 = vmax.f32 %v1335_v50, %v1573_v51  ;;  %v2476_v35 = vpop.f32.mrb[77].mxu0  ;;  %v2544_v36 = vpop.f32.mrb[77].mxu1  ;;  %v3375_v51 = vmax.f32 %v3159_v28, %v3161_v29 }
 0x1c6   : > { %v1338_v16 = vpop.f32.mrb[78].mxu0  ;;  %v1576_v1 = vpop.f32.mrb[78].mxu1  ;;  %v3376_v35 = vmax.f32 %v3165_v39, %v3167_v43 }
 0x1c7   : > { %v2171_v55 = vpack.c.bf16 %v1745_v0, %v1744_v22  ;;  %v1689_v58 = vmax.f32 %v3371_v56, %v1664_v15  ;;  %v1665_v42 = vmax.f32 %v1338_v16, %v1576_v1  ;;  %v2477_v40 = vpop.f32.mrb[79].mxu0  ;;  %v2545_v41 = vpop.f32.mrb[79].mxu1 }
 0x1c9   : > { %2207 = vst [vmem:[%s3231_s28 + $0x28] sm:$0xff] %v2171_v55   ;;  %v1721_v12 = vadd.f32 %v3218_v53, %v1689_v58  ;;  %v1690_v21 = vmax.f32 %v3372_v20, %v1665_v42  ;;  %v3377_v20 = vmax.f32 %v3171_v62, %v3173_v63 }
 0x1cb   : > { %v1722_v7 = vadd.f32 %v3218_v53, %v1690_v21  ;;  %v1746_v37 = vmax.f32 %v1721_v12, 0.0 }
 0x1cc   : > { %v1343_v27 = vpop.f32.mrb[80].mxu0  ;;  %v1581_v17 = vpop.f32.mrb[80].mxu1 }
 0x1cd   : > { %v1747_v5 = vmax.f32 %v1722_v7, 0.0  ;;  %v1666_v6 = vmax.f32 %v1343_v27, %v1581_v17  ;;  %v2480_v45 = vpop.f32.mrb[81].mxu0  ;;  %v2548_v46 = vpop.f32.mrb[81].mxu1  ;;  %v3378_v17 = vmax.f32 %v3177_v24, %v3179_v34 }
 0x1ce   : > { %v1346_v8 = vpop.f32.mrb[82].mxu0  ;;  %v1584_v61 = vpop.f32.mrb[82].mxu1 }
 0x1cf   : > { %v2176_v2 = vpack.c.bf16 %v1747_v5, %v1746_v37  ;;  %v1691_v26 = vmax.f32 %v3373_v25, %v1666_v6  ;;  %v1667_v19 = vmax.f32 %v1346_v8, %v1584_v61  ;;  %v2481_v54 = vpop.f32.mrb[83].mxu0  ;;  %v2549_v57 = vpop.f32.mrb[83].mxu1 }
 0x1d1   : > { %2208 = vst [vmem:[%s3231_s28 + $0x30] sm:$0xff] %v2176_v2   ;;  %v1723_v38 = vadd.f32 %v3218_v53, %v1691_v26  ;;  %v1692_v10 = vmax.f32 %v3374_v32, %v1667_v19  ;;  %v3379_v19 = vmax.f32 %v3183_v48, %v3185_v52  ;;  %v3380_v32 = vmax.f32 %v3189_v13, %v3191_v23 }
 0x1d3   : > { %v1724_v11 = vadd.f32 %v3218_v53, %v1692_v10  ;;  %v1748_v31 = vmax.f32 %v1723_v38, 0.0 }
 0x1d4   : > { %v1351_v59 = vpop.f32.mrb[84].mxu0  ;;  %v1589_v30 = vpop.f32.mrb[84].mxu1 }
 0x1d5   : > { %v1749_v60 = vmax.f32 %v1724_v11, 0.0  ;;  %v1668_v9 = vmax.f32 %v1351_v59, %v1589_v30  ;;  %v2484_v3 = vpop.f32.mrb[85].mxu0  ;;  %v2552_v4 = vpop.f32.mrb[85].mxu1 }
 0x1d6   : > { %v1354_v47 = vpop.f32.mrb[86].mxu0  ;;  %v1592_v49 = vpop.f32.mrb[86].mxu1 }
 0x1d7   : > { %v2181_v50 = vpack.c.bf16 %v1749_v60, %v1748_v31  ;;  %v1693_v22 = vmax.f32 %v3375_v51, %v1668_v9  ;;  %v1669_v0 = vmax.f32 %v1354_v47, %v1592_v49  ;;  %v2485_v14 = vpop.f32.mrb[87].mxu0  ;;  %v2553_v18 = vpop.f32.mrb[87].mxu1  ;;  %v3381_v49 = vmax.f32 %v3195_v33, %v3197_v44 }
 0x1d8   : > { %v3383_v14 = vld [vmem:[#allocation4_spill] sm:$0xff] }
 0x1d9   : > { %2209 = vst [vmem:[%s3231_s28 + $0x38] sm:$0xff] %v2181_v50   ;;  %v1725_v15 = vadd.f32 %v3218_v53, %v1693_v22  ;;  %v1694_v36 = vmax.f32 %v3376_v35, %v1669_v0  ;;  %v3382_v0 = vld [vmem:[#allocation3_spill] sm:$0xff] }
 0x1da   : > { %v3384_v18 = vmax.f32 %v3382_v0, %v3383_v14 }
 0x1db   : > { %v1726_v16 = vadd.f32 %v3218_v53, %v1694_v36  ;;  %v1750_v56 = vmax.f32 %v1725_v15, 0.0 }
 0x1dc   : > { %v1359_v1 = vpop.f32.mrb[88].mxu0  ;;  %v1597_v55 = vpop.f32.mrb[88].mxu1 }
 0x1dd   : > { %v1751_v58 = vmax.f32 %v1726_v16, 0.0  ;;  %v1670_v42 = vmax.f32 %v1359_v1, %v1597_v55  ;;  %v2488_v28 = vpop.f32.mrb[89].mxu0  ;;  %v2556_v29 = vpop.f32.mrb[89].mxu1 }
 0x1de   : > { %v1362_v40 = vpop.f32.mrb[90].mxu0  ;;  %v1600_v41 = vpop.f32.mrb[90].mxu1  ;;  %v3385_v29 = vld [vmem:[#allocation5_spill] sm:$0xff] }
 0x1df   : > { %v2186_v12 = vpack.c.bf16 %v1751_v58, %v1750_v56  ;;  %v1695_v21 = vmax.f32 %v3377_v20, %v1670_v42  ;;  %v1671_v7 = vmax.f32 %v1362_v40, %v1600_v41  ;;  %v2489_v39 = vpop.f32.mrb[91].mxu0  ;;  %v2557_v43 = vpop.f32.mrb[91].mxu1  ;;  %v3386_v40 = vld [vmem:[#allocation6_spill] sm:$0xff] }
 0x1e0   : > { %v3387_v41 = vmax.f32 %v3385_v29, %v3386_v40 }
 0x1e1   : > { %2210 = vst [vmem:[%s3231_s28 + $0x40] sm:$0xff] %v2186_v12   ;;  %v1727_v27 = vadd.f32 %v3218_v53, %v1695_v21  ;;  %v1696_v37 = vmax.f32 %v3378_v17, %v1671_v7 }
 0x1e3   : > { %v1728_v5 = vadd.f32 %v3218_v53, %v1696_v37  ;;  %v1752_v46 = vmax.f32 %v1727_v27, 0.0 }
 0x1e4   : > { %v1367_v6 = vpop.f32.mrb[92].mxu0  ;;  %v1605_v45 = vpop.f32.mrb[92].mxu1 }
 0x1e5   : > { %v1753_v8 = vmax.f32 %v1728_v5, 0.0  ;;  %v1672_v61 = vmax.f32 %v1367_v6, %v1605_v45  ;;  %v2492_v62 = vpop.f32.mrb[93].mxu0  ;;  %v2560_v63 = vpop.f32.mrb[93].mxu1 }
 0x1e6   : > { %v1370_v2 = vpop.f32.mrb[94].mxu0  ;;  %v1608_v25 = vpop.f32.mrb[94].mxu1 }
 0x1e7   : > { %v2191_v26 = vpack.c.bf16 %v1753_v8, %v1752_v46  ;;  %v1697_v54 = vmax.f32 %v3379_v19, %v1672_v61  ;;  %v1673_v57 = vmax.f32 %v1370_v2, %v1608_v25  ;;  %v2493_v24 = vpop.f32.mrb[95].mxu0  ;;  %v2561_v34 = vpop.f32.mrb[95].mxu1 }
 0x1e9   : > { %2211 = vst [vmem:[%s3231_s28 + $0x48] sm:$0xff] %v2191_v26   ;;  %v1729_v38 = vadd.f32 %v3218_v53, %v1697_v54  ;;  %v1698_v10 = vmax.f32 %v3380_v32, %v1673_v57 }
 0x1eb   : > { %v1730_v11 = vadd.f32 %v3218_v53, %v1698_v10  ;;  %v1754_v31 = vmax.f32 %v1729_v38, 0.0 }
 0x1ec   : > { %v1375_v59 = vpop.f32.mrb[96].mxu0  ;;  %v1613_v30 = vpop.f32.mrb[96].mxu1 }
 0x1ed   : > { %v1755_v60 = vmax.f32 %v1730_v11, 0.0  ;;  %v1674_v9 = vmax.f32 %v1375_v59, %v1613_v30  ;;  %v2496_v48 = vpop.f32.mrb[97].mxu0  ;;  %v2564_v52 = vpop.f32.mrb[97].mxu1 }
 0x1ee   : > { %v1378_v3 = vpop.f32.mrb[98].mxu0  ;;  %v1616_v4 = vpop.f32.mrb[98].mxu1 }
 0x1ef   : > { %v2196_v47 = vpack.c.bf16 %v1755_v60, %v1754_v31  ;;  %v1699_v50 = vmax.f32 %v3381_v49, %v1674_v9  ;;  %v1675_v51 = vmax.f32 %v1378_v3, %v1616_v4  ;;  %v2497_v13 = vpop.f32.mrb[99].mxu0  ;;  %v2565_v23 = vpop.f32.mrb[99].mxu1 }
 0x1f1   : > { %2212 = vst [vmem:[%s3231_s28 + $0x50] sm:$0xff] %v2196_v47   ;;  %v1731_v22 = vadd.f32 %v3218_v53, %v1699_v50  ;;  %v1700_v15 = vmax.f32 %v3384_v18, %v1675_v51 }
 0x1f3   : > { %v1732_v35 = vadd.f32 %v3218_v53, %v1700_v15  ;;  %v1756_v1 = vmax.f32 %v1731_v22, 0.0 }
 0x1f4   : > { %v1383_v36 = vpop.f32.mrb[100].mxu0  ;;  %v1621_v16 = vpop.f32.mrb[100].mxu1 }
 0x1f5   : > { %v1757_v55 = vmax.f32 %v1732_v35, 0.0  ;;  %v1676_v33 = vmax.f32 %v1383_v36, %v1621_v16  ;;  %v2500_v44 = vpop.f32.mrb[101].mxu0  ;;  %v2568_v56 = vpop.f32.mrb[101].mxu1 }
 0x1f6   : > { %v1386_v58 = vpop.f32.mrb[102].mxu0  ;;  %v1624_v42 = vpop.f32.mrb[102].mxu1 }
 0x1f7   : > { %v2201_v28 = vpack.c.bf16 %v1757_v55, %v1756_v1  ;;  %v1701_v12 = vmax.f32 %v3387_v41, %v1676_v33  ;;  %v2501_v20 = vpop.f32.mrb[103].mxu0  ;;  %v2569_v21 = vpop.f32.mrb[103].mxu1 }
 0x1f9   : > { %2213 = vst [vmem:[%s3231_s28 + $0x58] sm:$0xff] %v2201_v28   ;;  %v1733_v7 = vadd.f32 %v3218_v53, %v1701_v12 }
 0x1fb   : > { %v1758_v39 = vmax.f32 %v1733_v7, 0.0 }
 0x1fd   : > { %v2142_v43 = vpack.c.bf16 %v1758_v39, %v1758_v39 }
 0x1ff   : > { %1884 = vst [vmem:[%s3231_s28 + $0x60] sm:$0xf] %v2142_v43 }
 0x200 PF: > { %p10_p9 = scmp.ge.s32.totalorder %s2721_s16, 4   ;;  %s3388_s12 = smov %s2676_s13 }
 0x201   : > { %s3389_s13 = smov %s2730_s19  ;;  %s3390_s14 = smov %s2721_s16 }
 0x202   :  { %12 = sbr.rel (!%p10_p9) target bundleno = 2 (0x2), region = 111 }

// kernel: net_cifar10_forward.4
= control target key start
LH: loop header
LB: loop body
LE: loop exit
PB: predicated region body
PF: predicated region fallthrough
CT: control target
= control target key end

     0   :  { %s1102_s12 = smov 0   ;;  %s1104_s13 = smov 0   ;;  %s1277_s0 = inlined_call_operand.vmem [shape: bf16[4,64,256], index: 0, kind: input, shape index: {}]   ;;  %s1278_s1 = inlined_call_operand.vmem [shape: bf16[256,128], index: 1, kind: input, shape index: {}]   ;;  %s1279_s2 = inlined_call_operand.vmem [shape: f32[1,128], index: 2, kind: input, shape index: {}]   ;;  %s1280_s3 = inlined_call_operand.vmem [shape: bf16[64,128], index: 3, kind: output, shape index: {}]  }
   0x1   :  { %s1106_s14 = smov 0  }
   0x2 LB: > { %s802_s15 = sadd.s32 4294967295, %s1080_s14   ;;  %s1119_s16 = sadd.s32 1, %s1080_s14   ;;  %s1080_s14 = sphi %s1106_s14, %s1283_s14   ;;  %s1076_s13 = sphi %s1104_s13, %s1282_s13   ;;  %s1072_s12 = sphi %s1102_s12, %s1281_s12  }
   0x3   : > { %s17_s17 = ssub.s32 %s1080_s14, %s1119_s16  ;;  %s20_s18 = sadd.s32 1, %s1076_s13 }
   0x4   : > { %p18_p0 = scmp.eq.s32.totalorder %s17_s17, 0  ;;  %p27_p1 = scmp.ne.s32.totalorder %s1076_s13, %s1072_s12 }
   0x5   : > { %p28_p2 = scmp.eq.s32.totalorder %s1080_s14, 0  ;;  %p805_p4 = scmp.ge.s32.totalorder %s1080_s14, 2 }
   0x6   : > { %s1128_s19 = scalar_select %p18_p0, %s1076_s13, %s20_s18  }
   0x7   : > { %p29_p3 = por %p28_p2, %p27_p1  ;;  %127 = sbr.rel (%p805_p4) target bundleno = 26 (0x1a), region = 24 }
   0xe   : > { %130 = sbr.rel (!%p29_p3) target bundleno = 26 (0x1a), region = 28  ;;  %s132_s20 = sand.u32 (%p29_p3), 1, %s1076_s13  }
   0xf   : > { %s866_s21 = sshll.u32 (%p29_p3), %s1080_s14, 5  ;;  %s806_s22 = sshll.u32 (%p29_p3), %s132_s20, 7 }
  0x10   : > { %s1136_s25 = scalar_lea.vmem (%p29_p3), %s1277_s0, %s866_s21  ;;  %s134_s26 = scalar_lea.vmem (%p29_p3), [#allocation2], %s806_s22 }
  0x11   : > { %v196_v0 = vld [vmem:[%s1136_s25] sm:$0xff] (%p29_p3)  ;;  %v198_v1 = vld [vmem:[%s1136_s25 + $0x8] sm:$0xff] (%p29_p3)  ;;  %v200_v2 = vld [vmem:[%s1136_s25 + $0x10] sm:$0xff] (%p29_p3) }
  0x12   : > { %197 = vst [vmem:[%s134_s26] sm:$0xff] (%p29_p3), %v196_v0  ;;  %199 = vst [vmem:[%s134_s26 + $0x8] sm:$0xff] (%p29_p3), %v198_v1  ;;  %v202_v3 = vld [vmem:[%s1136_s25 + $0x18] sm:$0xff] (%p29_p3)  ;;  %v204_v4 = vld [vmem:[%s1136_s25 + $0x40] sm:$0xff] (%p29_p3) }
  0x13   : > { %201 = vst [vmem:[%s134_s26 + $0x10] sm:$0xff] (%p29_p3), %v200_v2  ;;  %v206_v5 = vld [vmem:[%s1136_s25 + $0x48] sm:$0xff] (%p29_p3)  ;;  %203 = vst [vmem:[%s134_s26 + $0x18] sm:$0xff] (%p29_p3), %v202_v3  ;;  %v208_v6 = vld [vmem:[%s1136_s25 + $0x50] sm:$0xff] (%p29_p3) }
  0x14   : > { %205 = vst [vmem:[%s134_s26 + $0x20] sm:$0xff] (%p29_p3), %v204_v4  ;;  %207 = vst [vmem:[%s134_s26 + $0x28] sm:$0xff] (%p29_p3), %v206_v5  ;;  %v210_v7 = vld [vmem:[%s1136_s25 + $0x58] sm:$0xff] (%p29_p3)  ;;  %v212_v8 = vld [vmem:[%s1136_s25 + $0x80] sm:$0xff] (%p29_p3) }
  0x15   : > { %209 = vst [vmem:[%s134_s26 + $0x30] sm:$0xff] %v208_v6  ;;  %211 = vst [vmem:[%s134_s26 + $0x38] sm:$0xff] %v210_v7  ;;  %v214_v9 = vld [vmem:[%s1136_s25 + $0x88] sm:$0xff]  ;;  %v216_v10 = vld [vmem:[%s1136_s25 + $0x90] sm:$0xff] }
  0x16   : > { %213 = vst [vmem:[%s134_s26 + $0x40] sm:$0xff] %v212_v8  ;;  %v218_v11 = vld [vmem:[%s1136_s25 + $0x98] sm:$0xff]  ;;  %215 = vst [vmem:[%s134_s26 + $0x48] sm:$0xff] %v214_v9  ;;  %v220_v12 = vld [vmem:[%s1136_s25 + $0xc0] sm:$0xff] }
  0x17   : > { %217 = vst [vmem:[%s134_s26 + $0x50] sm:$0xff] %v216_v10  ;;  %219 = vst [vmem:[%s134_s26 + $0x58] sm:$0xff] %v218_v11  ;;  %v222_v13 = vld [vmem:[%s1136_s25 + $0xc8] sm:$0xff]  ;;  %v224_v14 = vld [vmem:[%s1136_s25 + $0xd0] sm:$0xff] }
  0x18   : > { %221 = vst [vmem:[%s134_s26 + $0x60] sm:$0xff] %v220_v12  ;;  %223 = vst [vmem:[%s134_s26 + $0x68] sm:$0xff] %v222_v13  ;;  %v226_v15 = vld [vmem:[%s1136_s25 + $0xd8] sm:$0xff] }
  0x19   : > { %225 = vst [vmem:[%s134_s26 + $0x70] sm:$0xff] %v224_v14  ;;  %227 = vst [vmem:[%s134_s26 + $0x78] sm:$0xff] %v226_v15 }
  0x1a PF: > { %p810_p5 = scmp.ge.s32.totalorder %s1080_s14, 1  ;;  %p232_p6 = scmp.lt.s32.totalorder %s1080_s14, 3 }
  0x1c   : > { %p233_p7 = pnand %p810_p5, %p232_p6 }
  0x1d   : > { %v1018_v16 = vld [vmem:[%s1278_s1 + $0x40] sm:$0xff] (!%p233_p7)   ;;  %v1020_v18 = vld [vmem:[%s1278_s1 + $0x48] sm:$0xff] (!%p233_p7)   ;;  %v1173_v20 = vld [vmem:[%s1278_s1 + $0x50] sm:$0xff] (!%p233_p7)   ;;  %s239_s20 = sand.u32 (!%p233_p7), 1, %s1072_s12   ;;  %s812_s18 = sshll.u32 (!%p233_p7), %s802_s15, 2 }
  0x1e   : > { %236 = sbr.rel (%p233_p7) target bundleno = 330 (0x14a), region = 66  ;;  %v1019_v17 = vld [vmem:[%s1278_s1] sm:$0xff] (!%p233_p7)   ;;  %882 = vmatprep.subr.bf16.mxu0 (!%p233_p7), %v1018_v16  ;;  %910 = vmatprep.subr.bf16.mxu1 (!%p233_p7), %v1018_v16  ;;  %v1168_v19 = vld [vmem:[%s1278_s1 + $0x8] sm:$0xff] (!%p233_p7)   ;;  %v1180_v21 = vld [vmem:[%s1278_s1 + $0x10] sm:$0xff] (!%p233_p7)   ;;  %s811_s23 = sshll.u32 (!%p233_p7), %s239_s20, 7 }
  0x1f   : > { %883 = vmatpush3.bf16.msra.mxu0 (!%p233_p7), %v1019_v17  ;;  %911 = vmatpush3.bf16.msra.mxu1 (!%p233_p7), %v1019_v17  ;;  %v1187_v22 = vld [vmem:[%s1278_s1 + $0x58] sm:$0xff] (!%p233_p7)   ;;  %v1202_v24 = vld [vmem:[%s1278_s1 + $0x60] sm:$0xff] (!%p233_p7)   ;;  %v1028_v26 = vld [vmem:[%s1278_s1 + $0x68] sm:$0xff] (!%p233_p7)   ;;  %s1214_s29 = scalar_lea.vmem (!%p233_p7), [#allocation2], %s811_s23  ;;  %p264_p8 = scmp.lt.s32.totalorder (!%p233_p7), %s812_s18, 7 }
  0x20   : > { %884 = vmatprep.subr.bf16.mxu0 (!%p233_p7), %v1020_v18  ;;  %912 = vmatprep.subr.bf16.mxu1 (!%p233_p7), %v1020_v18  ;;  %v1195_v23 = vld [vmem:[%s1278_s1 + $0x18] sm:$0xff] (!%p233_p7)   ;;  %v1027_v25 = vld [vmem:[%s1278_s1 + $0x20] sm:$0xff] (!%p233_p7)   ;;  %v1029_v29 = vld [vmem:[%s1278_s1 + $0x28] sm:$0xff] (!%p233_p7)  }
  0x21   : > { %v1036_v27 = vld [vmem:[%s1214_s29 + $0x4] ss:$8 sps:$4 sm:$0xff] (!%p233_p7)   ;;  %v1030_v30 = vld [vmem:[%s1278_s1 + $0x70] sm:$0xff] (!%p233_p7)   ;;  %v1032_v32 = vld [vmem:[%s1278_s1 + $0x78] sm:$0xff] (!%p233_p7)  }
  0x22   : > { %v1039_v28 = vld [vmem:[%s1214_s29 + $0x24] ss:$8 sps:$4 sm:$0xff] (!%p233_p7)   ;;  %454 = vmatprep.mubr.bf16.mxu0 (!%p233_p7), %v1036_v27  ;;  %v1031_v31 = vld [vmem:[%s1278_s1 + $0x30] sm:$0xff] (!%p233_p7)   ;;  %v1033_v33 = vld [vmem:[%s1278_s1 + $0x38] sm:$0xff] (!%p233_p7)  }
  0x23   : > { %885 = vmatpush3.bf16.msra.mxu0 (!%p233_p7), %v1168_v19  ;;  %913 = vmatpush3.bf16.msra.mxu1 (!%p233_p7), %v1168_v19  ;;  %v1034_v34 = vld [vmem:[%s1214_s29] ss:$8 sps:$4 sm:$0xff] (!%p233_p7)   ;;  %v1040_v36 = vld [vmem:[%s1214_s29 + $0x14] ss:$8 sps:$4 sm:$0xff] (!%p233_p7)   ;;  %v1044_v38 = vld [vmem:[%s1214_s29 + $0x10] ss:$8 sps:$4 sm:$0xff] (!%p233_p7)  }
  0x24   : > { %886 = vmatprep.subr.bf16.mxu0 (!%p233_p7), %v1173_v20  ;;  %914 = vmatprep.subr.bf16.mxu1 (!%p233_p7), %v1173_v20  ;;  %v1037_v35 = vld [vmem:[%s1214_s29 + $0x20] ss:$8 sps:$4 sm:$0xff] (!%p233_p7)   ;;  %v1042_v37 = vld [vmem:[%s1214_s29 + $0x34] ss:$8 sps:$4 sm:$0xff] (!%p233_p7)   ;;  %v1045_v39 = vld [vmem:[%s1214_s29 + $0x30] ss:$8 sps:$4 sm:$0xff] (!%p233_p7)  }
  0x25   : > { %528 = vmatprep.mubr.bf16.mxu1 %v1039_v28  ;;  %v1048_v40 = vld [vmem:[%s1214_s29 + $0x44] ss:$8 sps:$4 sm:$0xff]   ;;  %v1046_v42 = vld [vmem:[%s1214_s29 + $0x40] ss:$8 sps:$4 sm:$0xff]   ;;  %v1052_v44 = vld [vmem:[%s1214_s29 + $0x54] ss:$8 sps:$4 sm:$0xff]  }
  0x26   : > { %v1051_v41 = vld [vmem:[%s1214_s29 + $0x64] ss:$8 sps:$4 sm:$0xff]   ;;  %v1049_v43 = vld [vmem:[%s1214_s29 + $0x60] ss:$8 sps:$4 sm:$0xff]   ;;  %v1054_v45 = vld [vmem:[%s1214_s29 + $0x74] ss:$8 sps:$4 sm:$0xff]  }
  0x27   : > { %887 = vmatpush3.bf16.msra.mxu0 %v1180_v21  ;;  %915 = vmatpush3.bf16.msra.mxu1 %v1180_v21  ;;  %v1056_v46 = vld [vmem:[%s1214_s29 + $0x50] ss:$8 sps:$4 sm:$0xff]   ;;  %s1285_s18 = smov (!%p264_p8, %s812_s18), 7 }
  0x28   : > { %888 = vmatprep.subr.bf16.mxu0 %v1187_v22  ;;  %916 = vmatprep.subr.bf16.mxu1 %v1187_v22  ;;  %v1057_v47 = vld [vmem:[%s1214_s29 + $0x70] ss:$8 sps:$4 sm:$0xff]   ;;  %s813_s14 = sshll.u32 %s1285_s18, 2 }
  0x29   : > { %s267_s23 = scalar_lea.vmem %s1280_s3, %s813_s14 }
  0x2b   : > { %889 = vmatpush3.bf16.msra.mxu0 %v1195_v23  ;;  %917 = vmatpush3.bf16.msra.mxu1 %v1195_v23 }
  0x2c   : > { %890 = vmatprep.subr.bf16.mxu0 %v1202_v24  ;;  %918 = vmatprep.subr.bf16.mxu1 %v1202_v24 }
  0x2f   : > { %891 = vmatpush3.bf16.msra.mxu0 %v1027_v25  ;;  %919 = vmatpush3.bf16.msra.mxu1 %v1027_v25 }
  0x30   : > { %892 = vmatprep.subr.bf16.mxu0 %v1028_v26  ;;  %920 = vmatprep.subr.bf16.mxu1 %v1028_v26 }
  0x33   : > { %893 = vmatpush3.bf16.msra.mxu0 %v1029_v29  ;;  %921 = vmatpush3.bf16.msra.mxu1 %v1029_v29 }
  0x34   : > { %894 = vmatprep.subr.bf16.mxu0 %v1030_v30  ;;  %922 = vmatprep.subr.bf16.mxu1 %v1030_v30 }
  0x37   : > { %895 = vmatpush3.bf16.msra.mxu0 %v1031_v31  ;;  %923 = vmatpush3.bf16.msra.mxu1 %v1031_v31 }
  0x38   : > { %896 = vmatprep.subr.bf16.mxu0 %v1032_v32  ;;  %924 = vmatprep.subr.bf16.mxu1 %v1032_v32 }
  0x3b   : > { %897 = vmatpush3.bf16.msra.mxu0 %v1033_v33  ;;  %925 = vmatpush3.bf16.msra.mxu1 %v1033_v33 }
  0x3c   : > { %938 = vmatprep.subr.bf16.mxu0 %v1018_v16  ;;  %966 = vmatprep.subr.bf16.mxu1 %v1018_v16 }
  0x3e   : > { %455 = vmatmul.mubr.bf16.vlgmr.msra.gmra.mrb[0].mxu0 %v1034_v34  ;;  %529 = vmatmul.mubr.bf16.vlgmr.msra.gmra.mrb[0].mxu1 %v1037_v35 }
  0x3f   : > { %939 = vmatpush3.bf16.msra.mxu0 %v1019_v17  ;;  %967 = vmatpush3.bf16.msra.mxu1 %v1019_v17 }
  0x40   : > { %940 = vmatprep.subr.bf16.mxu0 %v1020_v18  ;;  %968 = vmatprep.subr.bf16.mxu1 %v1020_v18 }
  0x41   : > { %462 = vmatprep.mubr.bf16.mxu0 %v1040_v36  ;;  %536 = vmatprep.mubr.bf16.mxu1 %v1042_v37 }
  0x43   : > { %941 = vmatpush3.bf16.msra.mxu0 %v1168_v19  ;;  %969 = vmatpush3.bf16.msra.mxu1 %v1168_v19 }
  0x44   : > { %942 = vmatprep.subr.bf16.mxu0 %v1173_v20  ;;  %970 = vmatprep.subr.bf16.mxu1 %v1173_v20 }
  0x46   : > { %463 = vmatmul.mubr.bf16.gmra.mrb[4].mxu0 %v1044_v38  ;;  %537 = vmatmul.mubr.bf16.gmra.mrb[4].mxu1 %v1045_v39 }
  0x47   : > { %943 = vmatpush3.bf16.msra.mxu0 %v1180_v21  ;;  %971 = vmatpush3.bf16.msra.mxu1 %v1180_v21 }
  0x48   : > { %944 = vmatprep.subr.bf16.mxu0 %v1187_v22  ;;  %972 = vmatprep.subr.bf16.mxu1 %v1187_v22 }
  0x49   : > { %602 = vmatprep.mubr.bf16.mxu0 %v1048_v40  ;;  %676 = vmatprep.mubr.bf16.mxu1 %v1051_v41 }
  0x4b   : > { %945 = vmatpush3.bf16.msra.mxu0 %v1195_v23  ;;  %973 = vmatpush3.bf16.msra.mxu1 %v1195_v23 }
  0x4c   : > { %946 = vmatprep.subr.bf16.mxu0 %v1202_v24  ;;  %974 = vmatprep.subr.bf16.mxu1 %v1202_v24 }
  0x4f   : > { %947 = vmatpush3.bf16.msra.mxu0 %v1027_v25  ;;  %975 = vmatpush3.bf16.msra.mxu1 %v1027_v25  ;;  %v858_v25 = vld [vmem:[%s1279_s2] ss:$0 sm:$0xff] }
  0x50   : > { %948 = vmatprep.subr.bf16.mxu0 %v1028_v26  ;;  %976 = vmatprep.subr.bf16.mxu1 %v1028_v26 }
  0x53   : > { %949 = vmatpush3.bf16.msra.mxu0 %v1029_v29  ;;  %977 = vmatpush3.bf16.msra.mxu1 %v1029_v29 }
  0x54   : > { %950 = vmatprep.subr.bf16.mxu0 %v1030_v30  ;;  %978 = vmatprep.subr.bf16.mxu1 %v1030_v30 }
  0x57   : > { %951 = vmatpush3.bf16.msra.mxu0 %v1031_v31  ;;  %979 = vmatpush3.bf16.msra.mxu1 %v1031_v31 }
  0x58   : > { %952 = vmatprep.subr.bf16.mxu0 %v1032_v32  ;;  %980 = vmatprep.subr.bf16.mxu1 %v1032_v32 }
  0x5b   : > { %953 = vmatpush3.bf16.msra.mxu0 %v1033_v33  ;;  %981 = vmatpush3.bf16.msra.mxu1 %v1033_v33 }
  0x5e   : > { %603 = vmatmul.mubr.bf16.vlgmr.msra.gmra.mrb[8].mxu0 %v1046_v42  ;;  %677 = vmatmul.mubr.bf16.vlgmr.msra.gmra.mrb[8].mxu1 %v1049_v43 }
  0x5f   : > { %610 = vmatprep.mubr.bf16.mxu0 %v1052_v44  ;;  %684 = vmatprep.mubr.bf16.mxu1 %v1054_v45 }
  0x66   : > { %611 = vmatmul.mubr.bf16.gmra.mrb[12].mxu0 %v1056_v46  ;;  %685 = vmatmul.mubr.bf16.gmra.mrb[12].mxu1 %v1057_v47 }
 0x111   : > { %v898_v48 = vpop.f32.mrb[0].mxu0  ;;  %v926_v49 = vpop.f32.mrb[0].mxu1 }
 0x112   : > { %v899_v50 = vpop.f32.mrb[1].mxu0  ;;  %v927_v51 = vpop.f32.mrb[1].mxu1 }
 0x113   : > { %v900_v52 = vadd.f32 %v899_v50, %v898_v48  ;;  %v928_v53 = vadd.f32 %v927_v51, %v926_v49  ;;  %v901_v54 = vpop.f32.mrb[2].mxu0  ;;  %v929_v55 = vpop.f32.mrb[2].mxu1 }
 0x114   : > { %v902_v56 = vpop.f32.mrb[3].mxu0  ;;  %v930_v57 = vpop.f32.mrb[3].mxu1 }
 0x115   : > { %v693_v58 = vmax.f32 %v900_v52, %v928_v53  ;;  %v903_v59 = vadd.f32 %v902_v56, %v901_v54  ;;  %v931_v60 = vadd.f32 %v930_v57, %v929_v55 }
 0x117   : > { %v694_v61 = vmax.f32 %v903_v59, %v931_v60 }
 0x119   : > { %v904_v62 = vpop.f32.mrb[4].mxu0  ;;  %v932_v63 = vpop.f32.mrb[4].mxu1 }
 0x11a   : > { %v905_v0 = vpop.f32.mrb[5].mxu0  ;;  %v933_v1 = vpop.f32.mrb[5].mxu1 }
 0x11b   : > { %v906_v2 = vadd.f32 %v905_v0, %v904_v62  ;;  %v934_v3 = vadd.f32 %v933_v1, %v932_v63  ;;  %v907_v4 = vpop.f32.mrb[6].mxu0  ;;  %v935_v5 = vpop.f32.mrb[6].mxu1 }
 0x11c   : > { %v908_v6 = vpop.f32.mrb[7].mxu0  ;;  %v936_v7 = vpop.f32.mrb[7].mxu1 }
 0x11d   : > { %v695_v8 = vmax.f32 %v906_v2, %v934_v3  ;;  %v909_v9 = vadd.f32 %v908_v6, %v907_v4  ;;  %v937_v10 = vadd.f32 %v936_v7, %v935_v5 }
 0x11f   : > { %v696_v11 = vmax.f32 %v909_v9, %v937_v10 }
 0x131   : > { %v954_v12 = vpop.f32.mrb[8].mxu0  ;;  %v982_v13 = vpop.f32.mrb[8].mxu1 }
 0x132   : > { %v955_v14 = vpop.f32.mrb[9].mxu0  ;;  %v983_v15 = vpop.f32.mrb[9].mxu1 }
 0x133   : > { %v956_v16 = vadd.f32 %v955_v14, %v954_v12  ;;  %v984_v17 = vadd.f32 %v983_v15, %v982_v13  ;;  %v957_v18 = vpop.f32.mrb[10].mxu0  ;;  %v985_v19 = vpop.f32.mrb[10].mxu1 }
 0x134   : > { %v958_v20 = vpop.f32.mrb[11].mxu0  ;;  %v986_v21 = vpop.f32.mrb[11].mxu1 }
 0x135   : > { %v697_v22 = vmax.f32 %v956_v16, %v984_v17  ;;  %v959_v23 = vadd.f32 %v958_v20, %v957_v18  ;;  %v987_v24 = vadd.f32 %v986_v21, %v985_v19 }
 0x137   : > { %v701_v26 = vmax.f32 %v693_v58, %v697_v22  ;;  %v698_v27 = vmax.f32 %v959_v23, %v987_v24 }
 0x139   : > { %v712_v28 = vadd.f32 %v858_v25, %v701_v26  ;;  %v702_v29 = vmax.f32 %v694_v61, %v698_v27  ;;  %v960_v30 = vpop.f32.mrb[12].mxu0  ;;  %v988_v31 = vpop.f32.mrb[12].mxu1 }
 0x13a   : > { %v961_v32 = vpop.f32.mrb[13].mxu0  ;;  %v989_v33 = vpop.f32.mrb[13].mxu1 }
 0x13b   : > { %v713_v34 = vadd.f32 %v858_v25, %v702_v29  ;;  %v962_v35 = vadd.f32 %v961_v32, %v960_v30  ;;  %v990_v36 = vadd.f32 %v989_v33, %v988_v31  ;;  %v963_v37 = vpop.f32.mrb[14].mxu0  ;;  %v991_v38 = vpop.f32.mrb[14].mxu1  ;;  %v716_v39 = vmax.f32 %v712_v28, 0.0 }
 0x13c   : > { %v964_v40 = vpop.f32.mrb[15].mxu0  ;;  %v992_v41 = vpop.f32.mrb[15].mxu1 }
 0x13d   : > { %v717_v42 = vmax.f32 %v713_v34, 0.0  ;;  %v699_v43 = vmax.f32 %v962_v35, %v990_v36  ;;  %v965_v44 = vadd.f32 %v964_v40, %v963_v37  ;;  %v993_v45 = vadd.f32 %v992_v41, %v991_v38 }
 0x13f   : > { %v874_v46 = vpack.c.bf16 %v717_v42, %v716_v39  ;;  %v703_v47 = vmax.f32 %v695_v8, %v699_v43  ;;  %v700_v48 = vmax.f32 %v965_v44, %v993_v45 }
 0x141   : > { %875 = vst [vmem:[%s267_s23] sm:$0xff] %v874_v46   ;;  %v714_v49 = vadd.f32 %v858_v25, %v703_v47  ;;  %v704_v50 = vmax.f32 %v696_v11, %v700_v48 }
 0x143   : > { %v715_v51 = vadd.f32 %v858_v25, %v704_v50  ;;  %v718_v52 = vmax.f32 %v714_v49, 0.0 }
 0x145   : > { %v719_v53 = vmax.f32 %v715_v51, 0.0 }
 0x147   : > { %v879_v54 = vpack.c.bf16 %v719_v53, %v718_v52 }
 0x149   : > { %881 = vst [vmem:[%s267_s23 + $0x8] sm:$0xff] %v879_v54  }
 0x14a PF: > { %p10_p9 = scmp.ge.s32.totalorder %s1119_s16, 4   ;;  %s1281_s12 = smov %s1076_s13 }
 0x14b   : > { %s1282_s13 = smov %s1128_s19  ;;  %s1283_s14 = smov %s1119_s16 }
 0x14c   :  { %12 = sbr.rel (!%p10_p9) target bundleno = 2 (0x2), region = 108 }

// kernel: net_cifar10_forward.5
= control target key start
LH: loop header
LB: loop body
LE: loop exit
PB: predicated region body
PF: predicated region fallthrough
CT: control target
= control target key end

     0   :  { %v741_v0 = vmov 0   ;;  %vm249_vm0 = vcmask 130048   ;;  %v742_v32 = vmov 0.0   ;;  %vm743_vm1 = vmmov 0   ;;  %s952_s1 = inlined_call_operand.vmem [shape: bf16[400,128], index: 1, kind: input, shape index: {}]   ;;  %s953_s0 = inlined_call_operand.vmem [shape: bf16[8,400], index: 0, kind: input, shape index: {}]   ;;  %s954_s3 = inlined_call_operand.vmem [shape: bf16[128,128], index: 3, kind: input, shape index: {}]   ;;  %s955_s5 = inlined_call_operand.vmem [shape: bf16[128,128], index: 5, kind: input, shape index: {}]   ;;  %s956_s2 = inlined_call_operand.vmem [shape: f32[1,128], index: 2, kind: input, shape index: {}]   ;;  %s957_s4 = inlined_call_operand.vmem [shape: f32[1,128], index: 4, kind: input, shape index: {}]   ;;  %s958_s6 = inlined_call_operand.vmem [shape: f32[1,128], index: 6, kind: input, shape index: {}]   ;;  %s959_s7 = inlined_call_operand.vmem [shape: f32[8,128], index: 7, kind: output, shape index: {}]  }
   0x1   :  { %293 = vmatprep.subr.bf16.mxu1 %v741_v0  ;;  %v696_v1 = vld [vmem:[%s952_s1 + $0x40] sm:$0xff]   ;;  %v699_v4 = vld [vmem:[%s952_s1 + $0x48] sm:$0xff]   ;;  %v702_v7 = vld [vmem:[%s952_s1 + $0x50] sm:$0xff]  }
   0x2   :  { %v697_v2 = vld [vmem:[%s952_s1 + $0x80] sm:$0xff]   ;;  %613 = vmatprep.subr.bf16.mxu0 %v696_v1  ;;  %v700_v5 = vld [vmem:[%s952_s1 + $0x88] sm:$0xff]   ;;  %v703_v8 = vld [vmem:[%s952_s1 + $0x90] sm:$0xff]  }
   0x3   :  { %v698_v3 = vld [vmem:[%s952_s1] sm:$0xff]   ;;  %294 = vmatpush1.bf16.msra.mxu1 %v697_v2  ;;  %v701_v6 = vld [vmem:[%s952_s1 + $0x8] sm:$0xff]   ;;  %v704_v9 = vld [vmem:[%s952_s1 + $0x10] sm:$0xff]  }
   0x4   :  { %614 = vmatpush3.bf16.msra.mxu0 %v698_v3  ;;  %295 = vmatprep.subr.bf16.mxu1 %v741_v0  ;;  %v705_v10 = vld [vmem:[%s952_s1 + $0x58] sm:$0xff]   ;;  %v708_v13 = vld [vmem:[%s952_s1 + $0x60] sm:$0xff]   ;;  %v711_v16 = vld [vmem:[%s952_s1 + $0x68] sm:$0xff]  }
   0x5   :  { %615 = vmatprep.subr.bf16.mxu0 %v699_v4  ;;  %v706_v11 = vld [vmem:[%s952_s1 + $0x98] sm:$0xff]   ;;  %v709_v14 = vld [vmem:[%s952_s1 + $0xa0] sm:$0xff]   ;;  %v712_v17 = vld [vmem:[%s952_s1 + $0xa8] sm:$0xff]  }
   0x6   :  { %v707_v12 = vld [vmem:[%s952_s1 + $0x18] sm:$0xff]   ;;  %v710_v15 = vld [vmem:[%s952_s1 + $0x20] sm:$0xff]   ;;  %v713_v18 = vld [vmem:[%s952_s1 + $0x28] sm:$0xff]  }
   0x7   :  { %296 = vmatpush1.bf16.msra.mxu1 %v700_v5  ;;  %v714_v19 = vld [vmem:[%s952_s1 + $0x70] sm:$0xff]   ;;  %v27_v22 = vld [vmem:[%s953_s0] sm:$0xff]  ;;  %v717_v23 = vld [vmem:[%s952_s1 + $0x78] sm:$0xff]  }
   0x8   :  { %616 = vmatpush3.bf16.msra.mxu0 %v701_v6  ;;  %297 = vmatprep.subr.bf16.mxu1 %v741_v0  ;;  %v715_v20 = vld [vmem:[%s952_s1 + $0xb0] sm:$0xff]   ;;  %v566_v24 = vcombine.high %v27_v22, %v27_v22  ;;  %v28_v25 = vld [vmem:[%s953_s0 + $0x8] sm:$0xff]  ;;  %v718_v27 = vld [vmem:[%s952_s1 + $0xb8] sm:$0xff]   ;;  %v565_v30 = vcombine.low %v27_v22, %v27_v22 }
   0x9   :  { %617 = vmatprep.subr.bf16.mxu0 %v702_v7  ;;  %v716_v21 = vld [vmem:[%s952_s1 + $0x30] sm:$0xff]   ;;  %v568_v26 = vcombine.high %v28_v25, %v28_v25  ;;  %v719_v28 = vld [vmem:[%s952_s1 + $0x38] sm:$0xff]   ;;  %v722_v29 = vld [vmem:[%s952_s1 + $0xc0] sm:$0xff]   ;;  %v567_v33 = vcombine.low %v28_v25, %v28_v25 }
   0xa   :  { %285 = vmatprep.mubr.bf16.mxu0 %v566_v24  ;;  %v725_v31 = vld [vmem:[%s954_s3] sm:$0xff]   ;;  %v726_v34 = vld [vmem:[%s954_s3 + $0x8] sm:$0xff]   ;;  %v727_v35 = vld [vmem:[%s954_s3 + $0x10] sm:$0xff]  }
   0xb   :  { %298 = vmatpush1.bf16.msra.mxu1 %v703_v8  ;;  %594 = vmatprep.mubr.msk.bf16.mxu1 %vm249_vm0, %v568_v26  ;;  %v728_v36 = vld [vmem:[%s954_s3 + $0x18] sm:$0xff]   ;;  %v729_v37 = vld [vmem:[%s954_s3 + $0x20] sm:$0xff]   ;;  %v730_v38 = vld [vmem:[%s954_s3 + $0x28] sm:$0xff]  }
   0xc   :  { %618 = vmatpush3.bf16.msra.mxu0 %v704_v9  ;;  %299 = vmatprep.subr.bf16.mxu1 %v741_v0  ;;  %v731_v39 = vld [vmem:[%s954_s3 + $0x30] sm:$0xff]   ;;  %v732_v40 = vld [vmem:[%s954_s3 + $0x38] sm:$0xff]   ;;  %v733_v41 = vld [vmem:[%s955_s5] sm:$0xff]  }
   0xd   :  { %619 = vmatprep.subr.bf16.mxu0 %v705_v10  ;;  %v734_v42 = vld [vmem:[%s955_s5 + $0x8] sm:$0xff]   ;;  %v735_v43 = vld [vmem:[%s955_s5 + $0x10] sm:$0xff]   ;;  %v736_v44 = vld [vmem:[%s955_s5 + $0x18] sm:$0xff]  }
   0xe   :  { %v737_v45 = vld [vmem:[%s955_s5 + $0x20] sm:$0xff]   ;;  %v738_v46 = vld [vmem:[%s955_s5 + $0x28] sm:$0xff]   ;;  %v739_v61 = vld [vmem:[%s955_s5 + $0x30] sm:$0xff]  }
   0xf   :  { %300 = vmatpush1.bf16.msra.mxu1 %v706_v11  ;;  %v564_v49 = vld [vmem:[%s956_s2] ss:$0 sm:$0xff]  ;;  %v740_v62 = vld [vmem:[%s955_s5 + $0x38] sm:$0xff]  }
  0x10   :  { %620 = vmatpush3.bf16.msra.mxu0 %v707_v12  ;;  %301 = vmatprep.subr.bf16.mxu1 %v741_v0  ;;  %v595_v63 = vld [vmem:[%s957_s4] ss:$0 sm:$0xff] }
  0x11   :  { %621 = vmatprep.subr.bf16.mxu0 %v708_v13  ;;  %v604_v7 = vld [vmem:[%s958_s6] ss:$0 sm:$0xff] }
  0x13   :  { %302 = vmatpush1.bf16.msra.mxu1 %v709_v14 }
  0x14   :  { %622 = vmatpush3.bf16.msra.mxu0 %v710_v15  ;;  %303 = vmatprep.subr.bf16.mxu1 %v741_v0 }
  0x15   :  { %623 = vmatprep.subr.bf16.mxu0 %v711_v16 }
  0x17   :  { %304 = vmatpush1.bf16.msra.mxu1 %v712_v17 }
  0x18   :  { %624 = vmatpush3.bf16.msra.mxu0 %v713_v18  ;;  %305 = vmatprep.subr.bf16.mxu1 %v741_v0 }
  0x19   :  { %625 = vmatprep.subr.bf16.mxu0 %v714_v19 }
  0x1b   :  { %306 = vmatpush1.bf16.msra.mxu1 %v715_v20 }
  0x1c   :  { %626 = vmatpush3.bf16.msra.mxu0 %v716_v21  ;;  %307 = vmatprep.subr.bf16.mxu1 %v741_v0 }
  0x1d   :  { %627 = vmatprep.subr.bf16.mxu0 %v717_v23 }
  0x1f   :  { %308 = vmatpush1.bf16.msra.mxu1 %v718_v27 }
  0x20   :  { %628 = vmatpush3.bf16.msra.mxu0 %v719_v28  ;;  %309 = vmatprep.subr.bf16.mxu1 %v741_v0 }
  0x21   :  { %653 = vmatprep.subr.bf16.mxu0 %v742_v32 }
  0x23   :  { %286 = vmatmul.mubr.bf16.vlgmr.msra.gmra.mrb[0].mxu0 %v565_v30  ;;  %310 = vmatpush1.bf16.msra.mxu1 %v722_v29 }
  0x24   :  { %654 = vmatpush3.bf16.msra.mxu0 %v725_v31  ;;  %673 = vmatprep.subr.bf16.mxu1 %v742_v32 }
  0x25   :  { %655 = vmatprep.subr.bf16.mxu0 %v742_v32  ;;  %669 = vmatprep.mubr.msk.bf16.mxu0 %vm743_vm1, %v742_v32 }
  0x26   :  { %326 = vmatmul.mubr.bf16.vlgmr.msra.gmra.mrb[0].mxu1 %v567_v33 }
  0x27   :  { %689 = vmatprep.mubr.msk.bf16.mxu1 %vm743_vm1, %v742_v32  ;;  %674 = vmatpush3.bf16.msra.mxu1 %v733_v41 }
  0x28   :  { %656 = vmatpush3.bf16.msra.mxu0 %v726_v34  ;;  %675 = vmatprep.subr.bf16.mxu1 %v742_v32 }
  0x29   :  { %657 = vmatprep.subr.bf16.mxu0 %v742_v32 }
  0x2b   :  { %676 = vmatpush3.bf16.msra.mxu1 %v734_v42 }
  0x2c   :  { %658 = vmatpush3.bf16.msra.mxu0 %v727_v35  ;;  %677 = vmatprep.subr.bf16.mxu1 %v742_v32 }
  0x2d   :  { %659 = vmatprep.subr.bf16.mxu0 %v742_v32 }
  0x2f   :  { %678 = vmatpush3.bf16.msra.mxu1 %v735_v43 }
  0x30   :  { %660 = vmatpush3.bf16.msra.mxu0 %v728_v36  ;;  %679 = vmatprep.subr.bf16.mxu1 %v742_v32 }
  0x31   :  { %661 = vmatprep.subr.bf16.mxu0 %v742_v32 }
  0x33   :  { %680 = vmatpush3.bf16.msra.mxu1 %v736_v44 }
  0x34   :  { %662 = vmatpush3.bf16.msra.mxu0 %v729_v37  ;;  %681 = vmatprep.subr.bf16.mxu1 %v742_v32 }
  0x35   :  { %663 = vmatprep.subr.bf16.mxu0 %v742_v32 }
  0x37   :  { %682 = vmatpush3.bf16.msra.mxu1 %v737_v45 }
  0x38   :  { %664 = vmatpush3.bf16.msra.mxu0 %v730_v38  ;;  %683 = vmatprep.subr.bf16.mxu1 %v742_v32 }
  0x39   :  { %665 = vmatprep.subr.bf16.mxu0 %v742_v32 }
  0x3b   :  { %684 = vmatpush3.bf16.msra.mxu1 %v738_v46 }
  0x3c   :  { %666 = vmatpush3.bf16.msra.mxu0 %v731_v39  ;;  %685 = vmatprep.subr.bf16.mxu1 %v742_v32 }
  0x3d   :  { %667 = vmatprep.subr.bf16.mxu0 %v742_v32 }
  0x3f   :  { %686 = vmatpush3.bf16.msra.mxu1 %v739_v61 }
  0x40   :  { %668 = vmatpush3.bf16.msra.mxu0 %v732_v40  ;;  %687 = vmatprep.subr.bf16.mxu1 %v742_v32 }
  0x43   :  { %688 = vmatpush3.bf16.msra.mxu1 %v740_v62 }
  0xf6   :  { %v629_v47 = vpop.f32.mrb[0].mxu0 }
  0xf7   :  { %v630_v48 = vpop.f32.mrb[1].mxu0 }
  0xf8   :  { %v631_v50 = vadd.f32 %v630_v48, %v629_v47  ;;  %v632_v51 = vpop.f32.mrb[2].mxu0 }
  0xf9   :  { %v633_v52 = vpop.f32.mrb[3].mxu0  ;;  %v327_v53 = vpop.f32.mrb[0].mxu1 }
  0xfa   :  { %v288_v54 = vadd.f32 %v631_v50, %v564_v49  ;;  %v329_v55 = vpop.f32.mrb[1].mxu1 }
  0xfb   :  { %v330_v56 = vpop.f32.mrb[2].mxu1 }
  0xfc   :  { %v328_v57 = vadd.f32 %v327_v53, %v288_v54  ;;  %v331_v58 = vpop.f32.mrb[3].mxu1 }
  0xfe   :  { %v333_v59 = vmax.f32 %v328_v57, 0.0 }
 0x100   :  { %v334_v60 = vpack.c.bf16 %v333_v59, %v333_v59 }
 0x102   :  { %670 = vmatmul.mubr.bf16.vlgmr.msra.gmra.mrb[4].mxu0 %v334_v60 }
 0x1d5   :  { %v440_v0 = vpop.f32.mrb[4].mxu0 }
 0x1d6   :  { %v441_v1 = vadd.f32 %v595_v63, %v440_v0  ;;  %v671_v2 = vpop.f32.mrb[5].mxu0 }
 0x1d7   :  { %v443_v3 = vpop.f32.mrb[6].mxu0 }
 0x1d8   :  { %v446_v4 = vmax.f32 %v441_v1, 0.0  ;;  %v672_v5 = vpop.f32.mrb[7].mxu0 }
 0x1da   :  { %v447_v6 = vpack.c.bf16 %v446_v4, %v446_v4 }
 0x1dc   :  { %690 = vmatmul.mubr.bf16.vlgmr.msra.gmra.mrb[4].mxu1 %v447_v6 }
 0x2af   :  { %v553_v8 = vpop.f32.mrb[4].mxu1 }
 0x2b0   :  { %v554_v9 = vadd.f32 %v604_v7, %v553_v8  ;;  %v691_v10 = vpop.f32.mrb[5].mxu1 }
 0x2b1   :  { %v556_v11 = vpop.f32.mrb[6].mxu1 }
 0x2b2   :  { %559 = vst [vmem:[%s959_s7] sm:$0xff] %v554_v9  ;;  %v692_v12 = vpop.f32.mrb[7].mxu1 }

</bundles_post_ra>
